<compile_context>
chip_gen: v6e
topology: v6e:2x2x1
jax: 0.10.0
libtpu: 0.0.40
codegen_flags: <defaults>
</compile_context>

<pallas_src>
import functools

import jax
import jax.numpy as jnp
from jax.experimental import pallas as pl
from jax.experimental.pallas import tpu as pltpu


def _round_up(n, m):
    return ((n + m - 1) // m) * m


def _pick_tile(dim, cap, unit):
    """Largest tile <= cap that divides `dim` and is a multiple of `unit`
    (or the full dim if it already fits in `cap`)."""
    if dim <= cap:
        return dim
    t = (cap // unit) * unit
    while t >= unit:
        if dim % t == 0:
            return t
        t -= unit
    return dim


# -----------------------------------------------------------------------------
# Fused kernel: tap-folded conv matmul + bias + LeakyReLU(0.2) + per-M-tile
# BatchNorm partial statistics.
# grid = (M tiles ["parallel"], K tiles ["arbitrary" reduction, last]).
# -----------------------------------------------------------------------------
def _conv_lrelu_stats_kernel(p_ref, w_ref, b_ref, y_ref, st_ref):
    k = pl.program_id(1)
    nk = pl.num_programs(1)

    part = jnp.dot(p_ref[...], w_ref[...], preferred_element_type=jnp.float32)

    @pl.when(k == 0)
    def _():
        y_ref[...] = part

    @pl.when(k > 0)
    def _():
        y_ref[...] = y_ref[...] + part

    @pl.when(k == nk - 1)
    def _():
        y = y_ref[...] + b_ref[...]                 # conv bias
        y = jnp.where(y >= 0.0, y, 0.2 * y)         # LeakyReLU(0.2)
        y_ref[...] = y
        cp = y.shape[1]
        # Per-(M-tile, channel) partial BatchNorm statistics: row 0 = sum,
        # row 1 = sum of squares, rows 2..7 zero-padded (sublane alignment).
        st_ref[0, 0:1, :] = jnp.sum(y, axis=0, keepdims=True)
        st_ref[0, 1:2, :] = jnp.sum(y * y, axis=0, keepdims=True)
        st_ref[0, 2:8, :] = jnp.zeros((6, cp), jnp.float32)


def conv4s2p1_lrelu_stats(z_nhwc, w_k, bias_row, *, tm_cap=512, tk_cap=512):
    """4x4 / stride-2 / pad-1 conv + bias + LeakyReLU(0.2) on an NHWC input,
    plus per-channel (sum, sumsq) BatchNorm statistics.

    z_nhwc   : [N, H, W, Cin]  float32
    w_k      : [16*Cin, Coutp] bfloat16 (taps folded into K, Coutp % 128 == 0)
    bias_row : [1, Coutp]      float32
    returns  : y [N, H/2, W/2, Coutp] f32, sums [Coutp], sumsqs [Coutp], M
    """
    N, H, W, Cin = z_nhwc.shape
    Ho, Wo = H // 2, W // 2
    M = N * Ho * Wo
    K, Coutp = w_k.shape
    assert K == 16 * Cin

    # im2col in XLA (pure layout glue), taps folded into the K axis, bf16.
    # TODO(synk): for large feature maps, extract taps inside the kernel with
    # strided DMAs from an HBM-resident input instead of materializing patches.
    xp = jnp.pad(z_nhwc, ((0, 0), (1, 1), (1, 1), (0, 0)))
    cols = []
    for kh in range(4):
        for kw in range(4):
            cols.append(
                xp[:, kh:kh + 2 * Ho:2, kw:kw + 2 * Wo:2, :].reshape(M, Cin))
    patches = jnp.concatenate(cols, axis=1).astype(jnp.bfloat16)  # [M, 16*Cin]

    tm = _pick_tile(M, tm_cap, 8)
    tk = _pick_tile(K, tk_cap, 128)
    n_mt, n_kt = M // tm, K // tk

    y, stats = pl.pallas_call(
        _conv_lrelu_stats_kernel,
        out_shape=(
            jax.ShapeDtypeStruct((M, Coutp), jnp.float32),
            jax.ShapeDtypeStruct((n_mt, 8, Coutp), jnp.float32),
        ),
        grid_spec=pltpu.PrefetchScalarGridSpec(
            num_scalar_prefetch=0,
            grid=(n_mt, n_kt),
            in_specs=[
                pl.BlockSpec((tm, tk), lambda i, k: (i, k)),       # patches
                pl.BlockSpec((tk, Coutp), lambda i, k: (k, 0)),    # weights
                pl.BlockSpec((1, Coutp), lambda i, k: (0, 0)),     # bias
            ],
            out_specs=[
                pl.BlockSpec((tm, Coutp), lambda i, k: (i, 0)),    # y (resident)
                pl.BlockSpec((1, 8, Coutp), lambda i, k: (i, 0, 0)),  # stats
            ],
        ),
        compiler_params=pltpu.CompilerParams(
            dimension_semantics=("parallel", "arbitrary")),
    )(patches, w_k, bias_row)

    sums = jnp.sum(stats[:, 0, :], axis=0)
    sumsqs = jnp.sum(stats[:, 1, :], axis=0)
    return y.reshape(N, Ho, Wo, Coutp), sums, sumsqs, M


# -----------------------------------------------------------------------------
# Parameters (match torch init: conv weight ~ N(0, 0.001), bias = 0,
# BatchNorm gamma = 1, beta = 0)
# -----------------------------------------------------------------------------
def init_params(key, in_channels):
    chans = [in_channels, 256, 128, 16]
    params = []
    for li in range(3):
        cin, cout = chans[li], chans[li + 1]
        key, wk = jax.random.split(key)
        # torch layout [Cout, Cin, kH, kW] -> HWIO -> tap-folded [16*Cin, Coutp]
        w_torch = 0.001 * jax.random.normal(wk, (cout, cin, 4, 4), jnp.float32)
        w_hwio = jnp.transpose(w_torch, (2, 3, 1, 0))          # [4,4,Cin,Cout]
        coutp = _round_up(cout, 128)                           # lane-dense out
        w_k = w_hwio.reshape(16 * cin, cout)
        w_k = jnp.pad(w_k, ((0, 0), (0, coutp - cout))).astype(jnp.bfloat16)
        params.append(dict(
            w_hwio=w_hwio,                                     # f32 (reference)
            w_k=w_k,                                           # bf16 kernel wts
            bias=jnp.zeros((1, coutp), jnp.float32),
            gamma=jnp.ones((cout,), jnp.float32),
            beta=jnp.zeros((cout,), jnp.float32),
        ))
    return params


def da_feature_discriminator_v2(x_nchw, params):
    x = jnp.transpose(x_nchw, (0, 2, 3, 1)).astype(jnp.float32)   # NCHW -> NHWC
    for p in params:
        cout = p["gamma"].shape[0]
        y, sums, sumsqs, m = conv4s2p1_lrelu_stats(x, p["w_k"], p["bias"])
        y = y[..., :cout]                       # drop lane-padding channels
        mean = sums[:cout] / m
        var = sumsqs[:cout] / m - mean * mean   # biased variance (training BN)
        scale = p["gamma"] * jax.lax.rsqrt(var + 1e-5)
        shift = p["beta"] - mean * scale
        # BN apply is a per-channel affine; XLA fuses it into the next layer's
        # patch construction.  (It cannot be folded into the next conv's
        # weights because the conv's zero border padding must stay zero.)
        x = y * scale + shift
    return jnp.transpose(x, (0, 3, 1, 2))       # NHWC -> NCHW


# -----------------------------------------------------------------------------
# Pure-JAX reference (conv via lax.conv_general_dilated).  Operands are rounded
# to bf16 to match the kernel's intentional bf16 MXU inputs; everything else is
# exact f32.
# -----------------------------------------------------------------------------
def reference_forward(x_nchw, params):
    x = jnp.transpose(x_nchw, (0, 2, 3, 1)).astype(jnp.float32)
    for p in params:
        cout = p["gamma"].shape[0]
        w = p["w_hwio"].astype(jnp.bfloat16).astype(jnp.float32)
        xi = x.astype(jnp.bfloat16).astype(jnp.float32)
        y = jax.lax.conv_general_dilated(
            xi, w, window_strides=(2, 2), padding=((1, 1), (1, 1)),
            dimension_numbers=("NHWC", "HWIO", "NHWC"),
            precision=jax.lax.Precision.HIGHEST)
        y = y + p["bias"][0, :cout]
        y = jnp.where(y >= 0.0, y, 0.2 * y)
        mean = jnp.mean(y, axis=(0, 1, 2))
        var = jnp.mean((y - mean) ** 2, axis=(0, 1, 2))
        x = (y - mean) * (p["gamma"] * jax.lax.rsqrt(var + 1e-5)) + p["beta"]
    return jnp.transpose(x, (0, 3, 1, 2))


if __name__ == "__main__":
    key = jax.random.PRNGKey(0)
    key, xk = jax.random.split(key)

    in_channels = 4
    x = jax.random.normal(xk, (2, in_channels, 16, 16), jnp.float32)  # NCHW
    params = init_params(key, in_channels)

    fwd = jax.jit(functools.partial(da_feature_discriminator_v2, params=params))
    out = jax.block_until_ready(fwd(x))

    assert out.shape == (2, 16, 2, 2), out.shape
    assert bool(jnp.all(jnp.isfinite(out)))

    ref = jax.block_until_ready(
        jax.jit(functools.partial(reference_forward, params=params))(x))
    max_err = float(jnp.max(jnp.abs(out - ref)))
    assert max_err < 1e-2, max_err

    print("KERNEL_OK")
</pallas_src>

<mosaic_0001>
module attributes {stable_mosaic.version = 11 : i64} {
  func.func @_conv_lrelu_stats_kernel(%arg0: i32, %arg1: i32, %arg2: memref<128x64xbf16, #tpu.memory_space<vmem>>, %arg3: memref<64x256xbf16, #tpu.memory_space<vmem>>, %arg4: memref<1x256xf32, #tpu.memory_space<vmem>>, %arg5: memref<128x256xf32, #tpu.memory_space<vmem>>, %arg6: memref<1x8x256xf32, #tpu.memory_space<vmem>>) attributes {dimension_semantics = [#tpu.dimension_semantics<parallel>, #tpu.dimension_semantics<arbitrary>], iteration_bounds = array<i64: 1, 1>, scalar_prefetch = 0 : i64, scratch_operands = 0 : i64, tpu.core_type = #tpu.core_type<tc>, window_params = [{transform_indices = @transform_0, window_bounds = array<i64: 128, 64>}, {transform_indices = @transform_1, window_bounds = array<i64: 64, 256>}, {pipeline_mode = #tpu.pipeline_mode<synchronous>, transform_indices = @transform_2, window_bounds = array<i64: 1, 256>}, {transform_indices = @transform_3, window_bounds = array<i64: 128, 256>}, {transform_indices = @transform_4, window_bounds = array<i64: 1, 8, 256>}]} {
    %c0 = arith.constant 0 : index
    %c0_0 = arith.constant 0 : index
    %0 = vector.load %arg2[%c0, %c0_0] : memref<128x64xbf16, #tpu.memory_space<vmem>>, vector<128x64xbf16>
    %c0_1 = arith.constant 0 : index
    %c0_2 = arith.constant 0 : index
    %1 = vector.load %arg3[%c0_1, %c0_2] : memref<64x256xbf16, #tpu.memory_space<vmem>>, vector<64x256xbf16>
    %cst = arith.constant dense<0.000000e+00> : vector<128x256xf32>
    %2 = tpu.matmul %0, %1, %cst {dimension_numbers = #tpu.dot_dimension_numbers<[1], [0], [0], [1], [0, 0, 1, 1], [], []>} : vector<128x64xbf16>, vector<64x256xbf16>, vector<128x256xf32> -> vector<128x256xf32>
    %c0_i32 = arith.constant 0 : i32
    %3 = arith.cmpi eq, %arg1, %c0_i32 : i32
    %4 = arith.extui %3 : i1 to i32
    %c0_i32_3 = arith.constant 0 : i32
    %5 = arith.cmpi ne, %4, %c0_i32_3 : i32
    scf.if %5 {
      %c0_8 = arith.constant 0 : index
      %c0_9 = arith.constant 0 : index
      %12 = vector.load %arg5[%c0_8, %c0_9] : memref<128x256xf32, #tpu.memory_space<vmem>>, vector<128x256xf32>
      tpu.vector_store %arg5[%c0_8, %c0_9], %2 {strides = array<i32>} : memref<128x256xf32, #tpu.memory_space<vmem>>, vector<128x256xf32>,
    } else {
    }
    %c0_i32_4 = arith.constant 0 : i32
    %6 = arith.cmpi sgt, %arg1, %c0_i32_4 : i32
    %7 = arith.extui %6 : i1 to i32
    %c0_i32_5 = arith.constant 0 : i32
    %8 = arith.cmpi ne, %7, %c0_i32_5 : i32
    scf.if %8 {
      %c0_8 = arith.constant 0 : index
      %c0_9 = arith.constant 0 : index
      %12 = vector.load %arg5[%c0_8, %c0_9] : memref<128x256xf32, #tpu.memory_space<vmem>>, vector<128x256xf32>
      %13 = arith.addf %12, %2 : vector<128x256xf32>
      %c0_10 = arith.constant 0 : index
      %c0_11 = arith.constant 0 : index
      %14 = vector.load %arg5[%c0_10, %c0_11] : memref<128x256xf32, #tpu.memory_space<vmem>>, vector<128x256xf32>
      tpu.vector_store %arg5[%c0_10, %c0_11], %13 {strides = array<i32>} : memref<128x256xf32, #tpu.memory_space<vmem>>, vector<128x256xf32>,
    } else {
    }
    %c0_i32_6 = arith.constant 0 : i32
    %9 = arith.cmpi eq, %arg1, %c0_i32_6 : i32
    %10 = arith.extui %9 : i1 to i32
    %c0_i32_7 = arith.constant 0 : i32
    %11 = arith.cmpi ne, %10, %c0_i32_7 : i32
    scf.if %11 {
      %c0_8 = arith.constant 0 : index
      %c0_9 = arith.constant 0 : index
      %12 = vector.load %arg5[%c0_8, %c0_9] : memref<128x256xf32, #tpu.memory_space<vmem>>, vector<128x256xf32>
      %c0_10 = arith.constant 0 : index
      %c0_11 = arith.constant 0 : index
      %13 = vector.load %arg4[%c0_10, %c0_11] : memref<1x256xf32, #tpu.memory_space<vmem>>, vector<1x256xf32>
      %14 = vector.broadcast %13 : vector<1x256xf32> to vector<128x256xf32>
      %15 = arith.addf %12, %14 : vector<128x256xf32>
      %cst_12 = arith.constant 0.000000e+00 : f32
      %16 = vector.broadcast %cst_12 : f32 to vector<128x256xf32>
      %17 = arith.cmpf oge, %15, %16 : vector<128x256xf32>
      %cst_13 = arith.constant 2.000000e-01 : f32
      %18 = vector.broadcast %cst_13 : f32 to vector<128x256xf32>
      %19 = arith.mulf %18, %15 : vector<128x256xf32>
      %20 = arith.select %17, %15, %19 : vector<128x256xi1>, vector<128x256xf32>
      %c0_14 = arith.constant 0 : index
      %c0_15 = arith.constant 0 : index
      %21 = vector.load %arg5[%c0_14, %c0_15] : memref<128x256xf32, #tpu.memory_space<vmem>>, vector<128x256xf32>
      tpu.vector_store %arg5[%c0_14, %c0_15], %20 {strides = array<i32>} : memref<128x256xf32, #tpu.memory_space<vmem>>, vector<128x256xf32>,
      %cst_16 = arith.constant dense<0.000000e+00> : vector<256xf32>
      %22 = vector.multi_reduction <add>, %20, %cst_16 [0] : vector<128x256xf32> to vector<256xf32>
      %23 = vector.shape_cast %22 : vector<256xf32> to vector<1x256xf32>
      %c0_17 = arith.constant 0 : index
      %c0_18 = arith.constant 0 : index
      %c0_19 = arith.constant 0 : index
      %24 = vector.load %arg6[%c0_17, %c0_18, %c0_19] : memref<1x8x256xf32, #tpu.memory_space<vmem>>, vector<1x1x256xf32>
      %25 = vector.shape_cast %24 : vector<1x1x256xf32> to vector<1x256xf32>
      %26 = vector.shape_cast %23 : vector<1x256xf32> to vector<1x1x256xf32>
      tpu.vector_store %arg6[%c0_17, %c0_18, %c0_19], %26 {strides = array<i32>} : memref<1x8x256xf32, #tpu.memory_space<vmem>>, vector<1x1x256xf32>,
      %27 = arith.mulf %20, %20 : vector<128x256xf32>
      %cst_20 = arith.constant dense<0.000000e+00> : vector<256xf32>
      %28 = vector.multi_reduction <add>, %27, %cst_20 [0] : vector<128x256xf32> to vector<256xf32>
      %29 = vector.shape_cast %28 : vector<256xf32> to vector<1x256xf32>
      %c0_21 = arith.constant 0 : index
      %c1 = arith.constant 1 : index
      %c0_22 = arith.constant 0 : index
      %30 = vector.load %arg6[%c0_21, %c1, %c0_22] : memref<1x8x256xf32, #tpu.memory_space<vmem>>, vector<1x1x256xf32>
      %31 = vector.shape_cast %30 : vector<1x1x256xf32> to vector<1x256xf32>
      %32 = vector.shape_cast %29 : vector<1x256xf32> to vector<1x1x256xf32>
      tpu.vector_store %arg6[%c0_21, %c1, %c0_22], %32 {strides = array<i32>} : memref<1x8x256xf32, #tpu.memory_space<vmem>>, vector<1x1x256xf32>,
      %cst_23 = arith.constant 0.000000e+00 : f32
      %33 = vector.broadcast %cst_23 : f32 to vector<6x256xf32>
      %c0_24 = arith.constant 0 : index
      %c2 = arith.constant 2 : index
      %c0_25 = arith.constant 0 : index
      %34 = vector.load %arg6[%c0_24, %c2, %c0_25] : memref<1x8x256xf32, #tpu.memory_space<vmem>>, vector<1x6x256xf32>
      %35 = vector.shape_cast %34 : vector<1x6x256xf32> to vector<6x256xf32>
      %36 = vector.shape_cast %33 : vector<6x256xf32> to vector<1x6x256xf32>
      tpu.vector_store %arg6[%c0_24, %c2, %c0_25], %36 {strides = array<i32>} : memref<1x8x256xf32, #tpu.memory_space<vmem>>, vector<1x6x256xf32>,
    } else {
    }
    return
  }
  func.func @transform_0(%arg0: i32, %arg1: i32) -> (i32, i32) {
    %c0_i32 = arith.constant 0 : i32
    return %arg0, %arg1 : i32, i32
  }
  func.func @transform_1(%arg0: i32, %arg1: i32) -> (i32, i32) {
    %c0_i32 = arith.constant 0 : i32
    %c0_i32_0 = arith.constant 0 : i32
    return %arg1, %c0_i32 : i32, i32
  }
  func.func @transform_2(%arg0: i32, %arg1: i32) -> (i32, i32) {
    %c0_i32 = arith.constant 0 : i32
    %c0_i32_0 = arith.constant 0 : i32
    %c0_i32_1 = arith.constant 0 : i32
    return %c0_i32, %c0_i32_0 : i32, i32
  }
  func.func @transform_3(%arg0: i32, %arg1: i32) -> (i32, i32) {
    %c0_i32 = arith.constant 0 : i32
    %c0_i32_0 = arith.constant 0 : i32
    return %arg0, %c0_i32 : i32, i32
  }
  func.func @transform_4(%arg0: i32, %arg1: i32) -> (i32, i32, i32) {
    %c0_i32 = arith.constant 0 : i32
    %c0_i32_0 = arith.constant 0 : i32
    %c0_i32_1 = arith.constant 0 : i32
    return %arg0, %c0_i32, %c0_i32_0 : i32, i32, i32
  }
}

module attributes {stable_mosaic.version = 11 : i64} {
  func.func @_conv_lrelu_stats_kernel(%arg0: i32, %arg1: i32, %arg2: memref<32x512xbf16, #tpu.memory_space<vmem>>, %arg3: memref<512x128xbf16, #tpu.memory_space<vmem>>, %arg4: memref<1x128xf32, #tpu.memory_space<vmem>>, %arg5: memref<32x128xf32, #tpu.memory_space<vmem>>, %arg6: memref<1x8x128xf32, #tpu.memory_space<vmem>>) attributes {dimension_semantics = [#tpu.dimension_semantics<parallel>, #tpu.dimension_semantics<arbitrary>], iteration_bounds = array<i64: 1, 8>, scalar_prefetch = 0 : i64, scratch_operands = 0 : i64, tpu.core_type = #tpu.core_type<tc>, window_params = [{transform_indices = @transform_0, window_bounds = array<i64: 32, 512>}, {transform_indices = @transform_1, window_bounds = array<i64: 512, 128>}, {pipeline_mode = #tpu.pipeline_mode<synchronous>, transform_indices = @transform_2, window_bounds = array<i64: 1, 128>}, {transform_indices = @transform_3, window_bounds = array<i64: 32, 128>}, {transform_indices = @transform_4, window_bounds = array<i64: 1, 8, 128>}]} {
    %c0 = arith.constant 0 : index
    %c0_0 = arith.constant 0 : index
    %0 = vector.load %arg2[%c0, %c0_0] : memref<32x512xbf16, #tpu.memory_space<vmem>>, vector<32x512xbf16>
    %c0_1 = arith.constant 0 : index
    %c0_2 = arith.constant 0 : index
    %1 = vector.load %arg3[%c0_1, %c0_2] : memref<512x128xbf16, #tpu.memory_space<vmem>>, vector<512x128xbf16>
    %cst = arith.constant dense<0.000000e+00> : vector<32x128xf32>
    %2 = tpu.matmul %0, %1, %cst {dimension_numbers = #tpu.dot_dimension_numbers<[1], [0], [0], [1], [0, 0, 1, 1], [], []>} : vector<32x512xbf16>, vector<512x128xbf16>, vector<32x128xf32> -> vector<32x128xf32>
    %c0_i32 = arith.constant 0 : i32
    %3 = arith.cmpi eq, %arg1, %c0_i32 : i32
    %4 = arith.extui %3 : i1 to i32
    %c0_i32_3 = arith.constant 0 : i32
    %5 = arith.cmpi ne, %4, %c0_i32_3 : i32
    scf.if %5 {
      %c0_7 = arith.constant 0 : index
      %c0_8 = arith.constant 0 : index
      %12 = vector.load %arg5[%c0_7, %c0_8] : memref<32x128xf32, #tpu.memory_space<vmem>>, vector<32x128xf32>
      tpu.vector_store %arg5[%c0_7, %c0_8], %2 {strides = array<i32>} : memref<32x128xf32, #tpu.memory_space<vmem>>, vector<32x128xf32>,
    } else {
    }
    %c0_i32_4 = arith.constant 0 : i32
    %6 = arith.cmpi sgt, %arg1, %c0_i32_4 : i32
    %7 = arith.extui %6 : i1 to i32
    %c0_i32_5 = arith.constant 0 : i32
    %8 = arith.cmpi ne, %7, %c0_i32_5 : i32
    scf.if %8 {
      %c0_7 = arith.constant 0 : index
      %c0_8 = arith.constant 0 : index
      %12 = vector.load %arg5[%c0_7, %c0_8] : memref<32x128xf32, #tpu.memory_space<vmem>>, vector<32x128xf32>
      %13 = arith.addf %12, %2 : vector<32x128xf32>
      %c0_9 = arith.constant 0 : index
      %c0_10 = arith.constant 0 : index
      %14 = vector.load %arg5[%c0_9, %c0_10] : memref<32x128xf32, #tpu.memory_space<vmem>>, vector<32x128xf32>
      tpu.vector_store %arg5[%c0_9, %c0_10], %13 {strides = array<i32>} : memref<32x128xf32, #tpu.memory_space<vmem>>, vector<32x128xf32>,
    } else {
    }
    %c7_i32 = arith.constant 7 : i32
    %9 = arith.cmpi eq, %arg1, %c7_i32 : i32
    %10 = arith.extui %9 : i1 to i32
    %c0_i32_6 = arith.constant 0 : i32
    %11 = arith.cmpi ne, %10, %c0_i32_6 : i32
    scf.if %11 {
      %c0_7 = arith.constant 0 : index
      %c0_8 = arith.constant 0 : index
      %12 = vector.load %arg5[%c0_7, %c0_8] : memref<32x128xf32, #tpu.memory_space<vmem>>, vector<32x128xf32>
      %c0_9 = arith.constant 0 : index
      %c0_10 = arith.constant 0 : index
      %13 = vector.load %arg4[%c0_9, %c0_10] : memref<1x128xf32, #tpu.memory_space<vmem>>, vector<1x128xf32>
      %14 = vector.broadcast %13 : vector<1x128xf32> to vector<32x128xf32>
      %15 = arith.addf %12, %14 : vector<32x128xf32>
      %cst_11 = arith.constant 0.000000e+00 : f32
      %16 = vector.broadcast %cst_11 : f32 to vector<32x128xf32>
      %17 = arith.cmpf oge, %15, %16 : vector<32x128xf32>
      %cst_12 = arith.constant 2.000000e-01 : f32
      %18 = vector.broadcast %cst_12 : f32 to vector<32x128xf32>
      %19 = arith.mulf %18, %15 : vector<32x128xf32>
      %20 = arith.select %17, %15, %19 : vector<32x128xi1>, vector<32x128xf32>
      %c0_13 = arith.constant 0 : index
      %c0_14 = arith.constant 0 : index
      %21 = vector.load %arg5[%c0_13, %c0_14] : memref<32x128xf32, #tpu.memory_space<vmem>>, vector<32x128xf32>
      tpu.vector_store %arg5[%c0_13, %c0_14], %20 {strides = array<i32>} : memref<32x128xf32, #tpu.memory_space<vmem>>, vector<32x128xf32>,
      %cst_15 = arith.constant dense<0.000000e+00> : vector<128xf32>
      %22 = vector.multi_reduction <add>, %20, %cst_15 [0] : vector<32x128xf32> to vector<128xf32>
      %23 = vector.shape_cast %22 : vector<128xf32> to vector<1x128xf32>
      %c0_16 = arith.constant 0 : index
      %c0_17 = arith.constant 0 : index
      %c0_18 = arith.constant 0 : index
      %24 = vector.load %arg6[%c0_16, %c0_17, %c0_18] : memref<1x8x128xf32, #tpu.memory_space<vmem>>, vector<1x1x128xf32>
      %25 = vector.shape_cast %24 : vector<1x1x128xf32> to vector<1x128xf32>
      %26 = vector.shape_cast %23 : vector<1x128xf32> to vector<1x1x128xf32>
      tpu.vector_store %arg6[%c0_16, %c0_17, %c0_18], %26 {strides = array<i32>} : memref<1x8x128xf32, #tpu.memory_space<vmem>>, vector<1x1x128xf32>,
      %27 = arith.mulf %20, %20 : vector<32x128xf32>
      %cst_19 = arith.constant dense<0.000000e+00> : vector<128xf32>
      %28 = vector.multi_reduction <add>, %27, %cst_19 [0] : vector<32x128xf32> to vector<128xf32>
      %29 = vector.shape_cast %28 : vector<128xf32> to vector<1x128xf32>
      %c0_20 = arith.constant 0 : index
      %c1 = arith.constant 1 : index
      %c0_21 = arith.constant 0 : index
      %30 = vector.load %arg6[%c0_20, %c1, %c0_21] : memref<1x8x128xf32, #tpu.memory_space<vmem>>, vector<1x1x128xf32>
      %31 = vector.shape_cast %30 : vector<1x1x128xf32> to vector<1x128xf32>
      %32 = vector.shape_cast %29 : vector<1x128xf32> to vector<1x1x128xf32>
      tpu.vector_store %arg6[%c0_20, %c1, %c0_21], %32 {strides = array<i32>} : memref<1x8x128xf32, #tpu.memory_space<vmem>>, vector<1x1x128xf32>,
      %cst_22 = arith.constant 0.000000e+00 : f32
      %33 = vector.broadcast %cst_22 : f32 to vector<6x128xf32>
      %c0_23 = arith.constant 0 : index
      %c2 = arith.constant 2 : index
      %c0_24 = arith.constant 0 : index
      %34 = vector.load %arg6[%c0_23, %c2, %c0_24] : memref<1x8x128xf32, #tpu.memory_space<vmem>>, vector<1x6x128xf32>
      %35 = vector.shape_cast %34 : vector<1x6x128xf32> to vector<6x128xf32>
      %36 = vector.shape_cast %33 : vector<6x128xf32> to vector<1x6x128xf32>
      tpu.vector_store %arg6[%c0_23, %c2, %c0_24], %36 {strides = array<i32>} : memref<1x8x128xf32, #tpu.memory_space<vmem>>, vector<1x6x128xf32>,
    } else {
    }
    return
  }
  func.func @transform_0(%arg0: i32, %arg1: i32) -> (i32, i32) {
    %c0_i32 = arith.constant 0 : i32
    return %arg0, %arg1 : i32, i32
  }
  func.func @transform_1(%arg0: i32, %arg1: i32) -> (i32, i32) {
    %c0_i32 = arith.constant 0 : i32
    %c0_i32_0 = arith.constant 0 : i32
    return %arg1, %c0_i32 : i32, i32
  }
  func.func @transform_2(%arg0: i32, %arg1: i32) -> (i32, i32) {
    %c0_i32 = arith.constant 0 : i32
    %c0_i32_0 = arith.constant 0 : i32
    %c0_i32_1 = arith.constant 0 : i32
    return %c0_i32, %c0_i32_0 : i32, i32
  }
  func.func @transform_3(%arg0: i32, %arg1: i32) -> (i32, i32) {
    %c0_i32 = arith.constant 0 : i32
    %c0_i32_0 = arith.constant 0 : i32
    return %arg0, %c0_i32 : i32, i32
  }
  func.func @transform_4(%arg0: i32, %arg1: i32) -> (i32, i32, i32) {
    %c0_i32 = arith.constant 0 : i32
    %c0_i32_0 = arith.constant 0 : i32
    %c0_i32_1 = arith.constant 0 : i32
    return %arg0, %c0_i32, %c0_i32_0 : i32, i32, i32
  }
}

module attributes {stable_mosaic.version = 11 : i64} {
  func.func @_conv_lrelu_stats_kernel(%arg0: i32, %arg1: i32, %arg2: memref<8x512xbf16, #tpu.memory_space<vmem>>, %arg3: memref<512x128xbf16, #tpu.memory_space<vmem>>, %arg4: memref<1x128xf32, #tpu.memory_space<vmem>>, %arg5: memref<8x128xf32, #tpu.memory_space<vmem>>, %arg6: memref<1x8x128xf32, #tpu.memory_space<vmem>>) attributes {dimension_semantics = [#tpu.dimension_semantics<parallel>, #tpu.dimension_semantics<arbitrary>], iteration_bounds = array<i64: 1, 4>, scalar_prefetch = 0 : i64, scratch_operands = 0 : i64, tpu.core_type = #tpu.core_type<tc>, window_params = [{transform_indices = @transform_0, window_bounds = array<i64: 8, 512>}, {transform_indices = @transform_1, window_bounds = array<i64: 512, 128>}, {pipeline_mode = #tpu.pipeline_mode<synchronous>, transform_indices = @transform_2, window_bounds = array<i64: 1, 128>}, {transform_indices = @transform_3, window_bounds = array<i64: 8, 128>}, {transform_indices = @transform_4, window_bounds = array<i64: 1, 8, 128>}]} {
    %c0 = arith.constant 0 : index
    %c0_0 = arith.constant 0 : index
    %0 = vector.load %arg2[%c0, %c0_0] : memref<8x512xbf16, #tpu.memory_space<vmem>>, vector<8x512xbf16>
    %c0_1 = arith.constant 0 : index
    %c0_2 = arith.constant 0 : index
    %1 = vector.load %arg3[%c0_1, %c0_2] : memref<512x128xbf16, #tpu.memory_space<vmem>>, vector<512x128xbf16>
    %cst = arith.constant dense<0.000000e+00> : vector<8x128xf32>
    %2 = tpu.matmul %0, %1, %cst {dimension_numbers = #tpu.dot_dimension_numbers<[1], [0], [0], [1], [0, 0, 1, 1], [], []>} : vector<8x512xbf16>, vector<512x128xbf16>, vector<8x128xf32> -> vector<8x128xf32>
    %c0_i32 = arith.constant 0 : i32
    %3 = arith.cmpi eq, %arg1, %c0_i32 : i32
    %4 = arith.extui %3 : i1 to i32
    %c0_i32_3 = arith.constant 0 : i32
    %5 = arith.cmpi ne, %4, %c0_i32_3 : i32
    scf.if %5 {
      %c0_7 = arith.constant 0 : index
      %c0_8 = arith.constant 0 : index
      %12 = vector.load %arg5[%c0_7, %c0_8] : memref<8x128xf32, #tpu.memory_space<vmem>>, vector<8x128xf32>
      tpu.vector_store %arg5[%c0_7, %c0_8], %2 {strides = array<i32>} : memref<8x128xf32, #tpu.memory_space<vmem>>, vector<8x128xf32>,
    } else {
    }
    %c0_i32_4 = arith.constant 0 : i32
    %6 = arith.cmpi sgt, %arg1, %c0_i32_4 : i32
    %7 = arith.extui %6 : i1 to i32
    %c0_i32_5 = arith.constant 0 : i32
    %8 = arith.cmpi ne, %7, %c0_i32_5 : i32
    scf.if %8 {
      %c0_7 = arith.constant 0 : index
      %c0_8 = arith.constant 0 : index
      %12 = vector.load %arg5[%c0_7, %c0_8] : memref<8x128xf32, #tpu.memory_space<vmem>>, vector<8x128xf32>
      %13 = arith.addf %12, %2 : vector<8x128xf32>
      %c0_9 = arith.constant 0 : index
      %c0_10 = arith.constant 0 : index
      %14 = vector.load %arg5[%c0_9, %c0_10] : memref<8x128xf32, #tpu.memory_space<vmem>>, vector<8x128xf32>
      tpu.vector_store %arg5[%c0_9, %c0_10], %13 {strides = array<i32>} : memref<8x128xf32, #tpu.memory_space<vmem>>, vector<8x128xf32>,
    } else {
    }
    %c3_i32 = arith.constant 3 : i32
    %9 = arith.cmpi eq, %arg1, %c3_i32 : i32
    %10 = arith.extui %9 : i1 to i32
    %c0_i32_6 = arith.constant 0 : i32
    %11 = arith.cmpi ne, %10, %c0_i32_6 : i32
    scf.if %11 {
      %c0_7 = arith.constant 0 : index
      %c0_8 = arith.constant 0 : index
      %12 = vector.load %arg5[%c0_7, %c0_8] : memref<8x128xf32, #tpu.memory_space<vmem>>, vector<8x128xf32>
      %c0_9 = arith.constant 0 : index
      %c0_10 = arith.constant 0 : index
      %13 = vector.load %arg4[%c0_9, %c0_10] : memref<1x128xf32, #tpu.memory_space<vmem>>, vector<1x128xf32>
      %14 = vector.broadcast %13 : vector<1x128xf32> to vector<8x128xf32>
      %15 = arith.addf %12, %14 : vector<8x128xf32>
      %cst_11 = arith.constant 0.000000e+00 : f32
      %16 = vector.broadcast %cst_11 : f32 to vector<8x128xf32>
      %17 = arith.cmpf oge, %15, %16 : vector<8x128xf32>
      %cst_12 = arith.constant 2.000000e-01 : f32
      %18 = vector.broadcast %cst_12 : f32 to vector<8x128xf32>
      %19 = arith.mulf %18, %15 : vector<8x128xf32>
      %20 = arith.select %17, %15, %19 : vector<8x128xi1>, vector<8x128xf32>
      %c0_13 = arith.constant 0 : index
      %c0_14 = arith.constant 0 : index
      %21 = vector.load %arg5[%c0_13, %c0_14] : memref<8x128xf32, #tpu.memory_space<vmem>>, vector<8x128xf32>
      tpu.vector_store %arg5[%c0_13, %c0_14], %20 {strides = array<i32>} : memref<8x128xf32, #tpu.memory_space<vmem>>, vector<8x128xf32>,
      %cst_15 = arith.constant dense<0.000000e+00> : vector<128xf32>
      %22 = vector.multi_reduction <add>, %20, %cst_15 [0] : vector<8x128xf32> to vector<128xf32>
      %23 = vector.shape_cast %22 : vector<128xf32> to vector<1x128xf32>
      %c0_16 = arith.constant 0 : index
      %c0_17 = arith.constant 0 : index
      %c0_18 = arith.constant 0 : index
      %24 = vector.load %arg6[%c0_16, %c0_17, %c0_18] : memref<1x8x128xf32, #tpu.memory_space<vmem>>, vector<1x1x128xf32>
      %25 = vector.shape_cast %24 : vector<1x1x128xf32> to vector<1x128xf32>
      %26 = vector.shape_cast %23 : vector<1x128xf32> to vector<1x1x128xf32>
      tpu.vector_store %arg6[%c0_16, %c0_17, %c0_18], %26 {strides = array<i32>} : memref<1x8x128xf32, #tpu.memory_space<vmem>>, vector<1x1x128xf32>,
      %27 = arith.mulf %20, %20 : vector<8x128xf32>
      %cst_19 = arith.constant dense<0.000000e+00> : vector<128xf32>
      %28 = vector.multi_reduction <add>, %27, %cst_19 [0] : vector<8x128xf32> to vector<128xf32>
      %29 = vector.shape_cast %28 : vector<128xf32> to vector<1x128xf32>
      %c0_20 = arith.constant 0 : index
      %c1 = arith.constant 1 : index
      %c0_21 = arith.constant 0 : index
      %30 = vector.load %arg6[%c0_20, %c1, %c0_21] : memref<1x8x128xf32, #tpu.memory_space<vmem>>, vector<1x1x128xf32>
      %31 = vector.shape_cast %30 : vector<1x1x128xf32> to vector<1x128xf32>
      %32 = vector.shape_cast %29 : vector<1x128xf32> to vector<1x1x128xf32>
      tpu.vector_store %arg6[%c0_20, %c1, %c0_21], %32 {strides = array<i32>} : memref<1x8x128xf32, #tpu.memory_space<vmem>>, vector<1x1x128xf32>,
      %cst_22 = arith.constant 0.000000e+00 : f32
      %33 = vector.broadcast %cst_22 : f32 to vector<6x128xf32>
      %c0_23 = arith.constant 0 : index
      %c2 = arith.constant 2 : index
      %c0_24 = arith.constant 0 : index
      %34 = vector.load %arg6[%c0_23, %c2, %c0_24] : memref<1x8x128xf32, #tpu.memory_space<vmem>>, vector<1x6x128xf32>
      %35 = vector.shape_cast %34 : vector<1x6x128xf32> to vector<6x128xf32>
      %36 = vector.shape_cast %33 : vector<6x128xf32> to vector<1x6x128xf32>
      tpu.vector_store %arg6[%c0_23, %c2, %c0_24], %36 {strides = array<i32>} : memref<1x8x128xf32, #tpu.memory_space<vmem>>, vector<1x6x128xf32>,
    } else {
    }
    return
  }
  func.func @transform_0(%arg0: i32, %arg1: i32) -> (i32, i32) {
    %c0_i32 = arith.constant 0 : i32
    return %arg0, %arg1 : i32, i32
  }
  func.func @transform_1(%arg0: i32, %arg1: i32) -> (i32, i32) {
    %c0_i32 = arith.constant 0 : i32
    %c0_i32_0 = arith.constant 0 : i32
    return %arg1, %c0_i32 : i32, i32
  }
  func.func @transform_2(%arg0: i32, %arg1: i32) -> (i32, i32) {
    %c0_i32 = arith.constant 0 : i32
    %c0_i32_0 = arith.constant 0 : i32
    %c0_i32_1 = arith.constant 0 : i32
    return %c0_i32, %c0_i32_0 : i32, i32
  }
  func.func @transform_3(%arg0: i32, %arg1: i32) -> (i32, i32) {
    %c0_i32 = arith.constant 0 : i32
    %c0_i32_0 = arith.constant 0 : i32
    return %arg0, %c0_i32 : i32, i32
  }
  func.func @transform_4(%arg0: i32, %arg1: i32) -> (i32, i32, i32) {
    %c0_i32 = arith.constant 0 : i32
    %c0_i32_0 = arith.constant 0 : i32
    %c0_i32_1 = arith.constant 0 : i32
    return %arg0, %c0_i32, %c0_i32_0 : i32, i32, i32
  }
}

</mosaic_0001>

<bundles_post_ra>
// kernel: da_feature_discriminator_v2.3
= control target key start
LH: loop header
LB: loop body
LE: loop exit
PB: predicated region body
PF: predicated region fallthrough
CT: control target
= control target key end

     0   :  { %v829_v1 = vmov 0   ;;  %vm121_vm0 = vcmask 523264   ;;  %v830_v17 = vmov 0.0   ;;  %v432_v18 = vlaneseq  ;;  %s1151_s1 = inlined_call_operand.vmem [shape: bf16[64,256], index: 1, kind: input, shape index: {}]   ;;  %s1152_s0 = inlined_call_operand.vmem [shape: bf16[128,64], index: 0, kind: input, shape index: {}]   ;;  %s1153_s4 = inlined_call_operand.vmem [shape: f32[1,8,256], index: 4, kind: output, shape index: {1}]   ;;  %s1154_s2 = inlined_call_operand.vmem [shape: f32[1,256], index: 2, kind: input, shape index: {}]   ;;  %s1155_s3 = inlined_call_operand.vmem [shape: f32[128,256], index: 3, kind: output, shape index: {0}]  }
   0x1   :  { %v809_v0 = vld [vmem:[%s1151_s1 + $0x34] ss:$8 sps:$4 sm:$0xff]   ;;  %178 = vmatprep.mubr.bf16.mxu0 %v829_v1  ;;  %218 = vmatprep.mubr.bf16.mxu1 %v829_v1  ;;  %v811_v2 = vld [vmem:[%s1151_s1 + $0x30] ss:$8 sps:$4 sm:$0xff]   ;;  %v812_v3 = vld [vmem:[%s1151_s1 + $0x24] ss:$8 sps:$4 sm:$0xff]  }
   0x2   :  { %154 = vmatprep.subr.bf16.mxu0 %v809_v0  ;;  %798 = vmatprep.subr.bf16.mxu1 %v809_v0  ;;  %v814_v4 = vld [vmem:[%s1151_s1 + $0x20] ss:$8 sps:$4 sm:$0xff]   ;;  %v815_v5 = vld [vmem:[%s1151_s1 + $0x14] ss:$8 sps:$4 sm:$0xff]   ;;  %v817_v6 = vld [vmem:[%s1151_s1 + $0x10] ss:$8 sps:$4 sm:$0xff]  }
   0x3   :  { %155 = vmatpush1.bf16.msra.mxu0 %v811_v2  ;;  %802 = vmatpush1.bf16.msra.mxu1 %v811_v2  ;;  %v818_v7 = vld [vmem:[%s1151_s1 + $0x4] ss:$8 sps:$4 sm:$0xff]   ;;  %v820_v8 = vld [vmem:[%s1151_s1] ss:$8 sps:$4 sm:$0xff]   ;;  %v824_v13 = vld [vmem:[%s1152_s0 + $0x10] sm:$0xff]   ;;  %763 = vst [vmem:[%s1153_s4] sm:$0xfc] %v830_v17 }
   0x4   :  { %156 = vmatprep.subr.bf16.mxu0 %v812_v3  ;;  %799 = vmatprep.subr.bf16.mxu1 %v812_v3  ;;  %v821_v9 = vld [vmem:[%s1152_s0] sm:$0xff]   ;;  %v822_v11 = vld [vmem:[%s1152_s0 + $0x8] sm:$0xff]   ;;  %v827_v14 = vld [vmem:[%s1152_s0 + $0x30] sm:$0xff]   ;;  %764 = vst [vmem:[%s1153_s4 + $0x8] sm:$0xfc] %v830_v17  ;;  %v920_v19 = vshrl.u32 %v432_v18, 7 }
   0x5   :  { %v823_v10 = vld [vmem:[%s1152_s0 + $0x20] sm:$0xff]   ;;  %v825_v12 = vld [vmem:[%s1152_s0 + $0x28] sm:$0xff]   ;;  %v826_v15 = vld [vmem:[%s1152_s0 + $0x18] sm:$0xff]  }
   0x6   :  { %v828_v16 = vld [vmem:[%s1152_s0 + $0x38] sm:$0xff]   ;;  %v434_v20 = vsub.s32 0, %v920_v19  ;;  %v430_v21 = vld [vmem:[%s1154_s2] sm:$0x3]  ;;  %v438_v22 = vsub.s32 1, %v920_v19 }
   0x7   :  { %157 = vmatpush1.bf16.msra.mxu0 %v814_v4  ;;  %803 = vmatpush1.bf16.msra.mxu1 %v814_v4 }
   0x8   :  { %158 = vmatprep.subr.bf16.mxu0 %v815_v5  ;;  %800 = vmatprep.subr.bf16.mxu1 %v815_v5  ;;  %v927_v23 = vrot.slane %v430_v21, %v434_v20  ;;  %v929_v24 = vrot.slane %v430_v21, %v438_v22 }
   0xb   :  { %159 = vmatpush1.bf16.msra.mxu0 %v817_v6  ;;  %804 = vmatpush1.bf16.msra.mxu1 %v817_v6 }
   0xc   :  { %160 = vmatprep.subr.bf16.mxu0 %v818_v7  ;;  %801 = vmatprep.subr.bf16.mxu1 %v818_v7 }
   0xf   :  { %161 = vmatpush1.bf16.msra.mxu0 %v820_v8  ;;  %805 = vmatpush1.bf16.msra.mxu1 %v820_v8 }
  0x12   :  { %789 = vmatmul.mubr.msk.bf16.vlgmr.msra.gmra.mxu0 %vm121_vm0, %v821_v9  ;;  %793 = vmatmul.mubr.msk.bf16.vlgmr.msra.gmra.mxu1 %vm121_vm0, %v823_v10 }
  0x13   :  { %188 = vmatprep.mubr.bf16.mxu0 %v829_v1  ;;  %228 = vmatprep.mubr.bf16.mxu1 %v829_v1 }
  0x1a   :  { %790 = vmatmul.mubr.msk.bf16.gmra.mxu0 %vm121_vm0, %v822_v11  ;;  %794 = vmatmul.mubr.msk.bf16.gmra.mxu1 %vm121_vm0, %v825_v12 }
  0x1b   :  { %198 = vmatprep.mubr.bf16.mxu0 %v829_v1  ;;  %238 = vmatprep.mubr.bf16.mxu1 %v829_v1 }
  0x22   :  { %791 = vmatmul.mubr.msk.bf16.gmra.mxu0 %vm121_vm0, %v824_v13  ;;  %795 = vmatmul.mubr.msk.bf16.gmra.mxu1 %vm121_vm0, %v827_v14 }
  0x23   :  { %208 = vmatprep.mubr.bf16.mxu0 %v829_v1  ;;  %248 = vmatprep.mubr.bf16.mxu1 %v829_v1 }
  0x2a   :  { %792 = vmatmul.mubr.msk.bf16.gmra.mxu0 %vm121_vm0, %v826_v15  ;;  %796 = vmatmul.mubr.msk.bf16.gmra.mxu1 %vm121_vm0, %v828_v16 }
  0xd2   :  { %v180_v25 = vpop.f32.mrf.mxu0  ;;  %v220_v26 = vpop.f32.mrf.mxu1 }
  0xd3   :  { %v442_v27 = vadd.f32 %v927_v23, %v180_v25  ;;  %v458_v28 = vadd.f32 %v927_v23, %v220_v26 }
  0xd4   :  { %v182_v29 = vpop.f32.mrf.mxu0  ;;  %v222_v30 = vpop.f32.mrf.mxu1 }
  0xd5   :  { %vm474_vm1 = vcmp.ge.f32.partialorder %v442_v27, 0.0  ;;  %v506_v31 = vmul.f32 0.2, %v442_v27  ;;  %v443_v32 = vadd.f32 %v929_v24, %v182_v29  ;;  %vm490_vm2 = vcmp.ge.f32.partialorder %v458_v28, 0.0 }
  0xd6   :  { %v184_v33 = vpop.f32.mrf.mxu0  ;;  %v522_v34 = vmul.f32 0.2, %v458_v28  ;;  %v459_v35 = vadd.f32 %v929_v24, %v222_v30  ;;  %v224_v36 = vpop.f32.mrf.mxu1 }
  0xd7   :  { %v538_v37 = vsel %vm474_vm1, %v442_v27, %v506_v31  ;;  %vm475_vm3 = vcmp.ge.f32.partialorder %v443_v32, 0.0  ;;  %v507_v38 = vmul.f32 0.2, %v443_v32  ;;  %v444_v39 = vadd.f32 %v927_v23, %v184_v33 }
  0xd8   :  { %570 = vst [vmem:[%s1155_s3] sm:$0xff] %v538_v37  ;;  %v186_v40 = vpop.f32.mrf.mxu0  ;;  %v939_v41 = vsel %vm490_vm2, %v458_v28, %v522_v34  ;;  %vm491_vm4 = vcmp.ge.f32.partialorder %v459_v35, 0.0  ;;  %v523_v42 = vmul.f32 0.2, %v459_v35  ;;  %v226_v43 = vpop.f32.mrf.mxu1  ;;  %v460_v49 = vadd.f32 %v927_v23, %v224_v36 }
  0xd9   :  { %v539_v44 = vsel %vm475_vm3, %v443_v32, %v507_v38  ;;  %vm476_vm5 = vcmp.ge.f32.partialorder %v444_v39, 0.0  ;;  %v508_v45 = vmul.f32 0.2, %v444_v39  ;;  %v445_v46 = vadd.f32 %v929_v24, %v186_v40  ;;  %586 = vst [vmem:[%s1155_s3 + $0x80] sm:$0xff] %v939_v41 }
  0xda   :  { %571 = vst [vmem:[%s1155_s3 + $0x8] sm:$0xff] %v539_v44  ;;  %v190_v47 = vpop.f32.mrf.mxu0  ;;  %v949_v48 = vsel %vm491_vm4, %v459_v35, %v523_v42  ;;  %v230_v50 = vpop.f32.mrf.mxu1  ;;  %vm492_vm7 = vcmp.ge.f32.partialorder %v460_v49, 0.0  ;;  %v668_v59 = vmul.f32 %v538_v37, %v538_v37  ;;  %v524_v63 = vmul.f32 0.2, %v460_v49 }
  0xdb   :  { %v540_v51 = vsel %vm476_vm5, %v444_v39, %v508_v45  ;;  %vm477_vm6 = vcmp.ge.f32.partialorder %v445_v46, 0.0  ;;  %v509_v52 = vmul.f32 0.2, %v445_v46  ;;  %v446_v53 = vadd.f32 %v927_v23, %v190_v47  ;;  %587 = vst [vmem:[%s1155_s3 + $0x88] sm:$0xff] %v949_v48 }
  0xdc   :  { %572 = vst [vmem:[%s1155_s3 + $0x10] sm:$0xff] %v540_v51  ;;  %v192_v54 = vpop.f32.mrf.mxu0  ;;  %v232_v55 = vpop.f32.mrf.mxu1  ;;  %v670_v60 = vmul.f32 %v540_v51, %v540_v51  ;;  %v669_v4 = vmul.f32 %v539_v44, %v539_v44  ;;  %v602_v5 = vadd.f32 %v540_v51, %v538_v37  ;;  %v972_v6 = vmul.f32 %v939_v41, %v939_v41 }
  0xdd   :  { %v541_v56 = vsel %vm477_vm6, %v445_v46, %v509_v52  ;;  %vm478_vm8 = vcmp.ge.f32.partialorder %v446_v53, 0.0  ;;  %v510_v57 = vmul.f32 0.2, %v446_v53  ;;  %v447_v58 = vadd.f32 %v929_v24, %v192_v54 }
  0xde   :  { %573 = vst [vmem:[%s1155_s3 + $0x18] sm:$0xff] %v541_v56  ;;  %v671_v61 = vmul.f32 %v541_v56, %v541_v56  ;;  %v194_v62 = vpop.f32.mrf.mxu0  ;;  %v964_v0 = vpop.f32.mrf.mxu1  ;;  %v975_v7 = vsel %vm492_vm7, %v460_v49, %v524_v63  ;;  %v979_v10 = vmul.f32 %v949_v48, %v949_v48  ;;  %v700_v12 = vadd.f32 %v670_v60, %v668_v59 }
  0xdf   :  { %v542_v1 = vsel %vm478_vm8, %v446_v53, %v510_v57  ;;  %vm479_vm9 = vcmp.ge.f32.partialorder %v447_v58, 0.0  ;;  %v511_v2 = vmul.f32 0.2, %v447_v58  ;;  %v448_v3 = vadd.f32 %v927_v23, %v194_v62  ;;  %588 = vst [vmem:[%s1155_s3 + $0x90] sm:$0xff] %v975_v7 }
  0xe0   :  { %574 = vst [vmem:[%s1155_s3 + $0x20] sm:$0xff] %v542_v1  ;;  %v196_v8 = vpop.f32.mrf.mxu0  ;;  %v623_v13 = vadd.f32 %v541_v56, %v539_v44  ;;  %v721_v14 = vadd.f32 %v671_v61, %v669_v4  ;;  %v236_v17 = vpop.f32.mrf.mxu1  ;;  %v461_v21 = vadd.f32 %v929_v24, %v226_v43  ;;  %v462_v25 = vadd.f32 %v927_v23, %v230_v50 }
  0xe1   :  { %v543_v9 = vsel %vm479_vm9, %v447_v58, %v511_v2  ;;  %vm480_vm10 = vcmp.ge.f32.partialorder %v448_v3, 0.0  ;;  %v512_v11 = vmul.f32 0.2, %v448_v3  ;;  %v449_v15 = vadd.f32 %v929_v24, %v196_v8 }
  0xe2   :  { %575 = vst [vmem:[%s1155_s3 + $0x28] sm:$0xff] %v543_v9  ;;  %v200_v16 = vpop.f32.mrf.mxu0  ;;  %v603_v26 = vadd.f32 %v602_v5, %v542_v1  ;;  %v672_v27 = vmul.f32 %v542_v1, %v542_v1  ;;  %v673_v28 = vmul.f32 %v543_v9, %v543_v9  ;;  %vm493_vm12 = vcmp.ge.f32.partialorder %v461_v21, 0.0  ;;  %v995_v36 = vpop.f32.mrf.mxu1 }
  0xe3   :  { %v544_v20 = vsel %vm480_vm10, %v448_v3, %v512_v11  ;;  %v450_v22 = vadd.f32 %v927_v23, %v200_v16  ;;  %vm481_vm11 = vcmp.ge.f32.partialorder %v449_v15, 0.0  ;;  %v513_v30 = vmul.f32 0.2, %v449_v15 }
  0xe4   :  { %576 = vst [vmem:[%s1155_s3 + $0x30] sm:$0xff] %v544_v20  ;;  %v202_v29 = vpop.f32.mrf.mxu0  ;;  %v525_v31 = vmul.f32 0.2, %v461_v21  ;;  %v674_v32 = vmul.f32 %v544_v20, %v544_v20  ;;  %vm494_vm14 = vcmp.ge.f32.partialorder %v462_v25, 0.0  ;;  %v526_v34 = vmul.f32 0.2, %v462_v25 }
  0xe5   :  { %vm482_vm13 = vcmp.ge.f32.partialorder %v450_v22, 0.0  ;;  %v514_v33 = vmul.f32 0.2, %v450_v22  ;;  %v545_v37 = vsel %vm481_vm11, %v449_v15, %v513_v30  ;;  %v451_v39 = vadd.f32 %v929_v24, %v202_v29 }
  0xe6   :  { %v204_v35 = vpop.f32.mrf.mxu0  ;;  %v997_v38 = vsel %vm493_vm12, %v461_v21, %v525_v31  ;;  %v463_v40 = vadd.f32 %v929_v24, %v232_v55  ;;  %v701_v42 = vadd.f32 %v700_v12, %v672_v27  ;;  %v624_v43 = vadd.f32 %v623_v13, %v543_v9  ;;  %577 = vst [vmem:[%s1155_s3 + $0x38] sm:$0xff] %v545_v37  ;;  %v242_v55 = vpop.f32.mrf.mxu1 }
  0xe7   :  { %v1003_v44 = vmul.f32 %v975_v7, %v975_v7  ;;  %589 = vst [vmem:[%s1155_s3 + $0x98] sm:$0xff] %v997_v38  ;;  %v546_v45 = vsel %vm482_vm13, %v450_v22, %v514_v33  ;;  %v722_v47 = vadd.f32 %v721_v14, %v673_v28  ;;  %v604_v49 = vadd.f32 %v603_v26, %v544_v20 }
  0xe8   :  { %v206_v46 = vpop.f32.mrf.mxu0  ;;  %578 = vst [vmem:[%s1155_s3 + $0x40] sm:$0xff] %v546_v45  ;;  %v1017_v50 = vsel %vm494_vm14, %v462_v25, %v526_v34  ;;  %vm483_vm15 = vcmp.ge.f32.partialorder %v451_v39, 0.0  ;;  %v702_v51 = vadd.f32 %v701_v42, %v674_v32  ;;  %v625_v52 = vadd.f32 %v624_v43, %v545_v37  ;;  %v244_v9 = vpop.f32.mrf.mxu1 }
  0xe9   :  { %590 = vst [vmem:[%s1155_s3 + $0xa0] sm:$0xff] %v1017_v50  ;;  %v515_v53 = vmul.f32 0.2, %v451_v39  ;;  %vm495_vm0 = vcmp.ge.f32.partialorder %v463_v40, 0.0  ;;  %v675_v56 = vmul.f32 %v545_v37, %v545_v37  ;;  %v527_v57 = vmul.f32 0.2, %v463_v40 }
  0xea   :  { %v210_v54 = vpop.f32.mrf.mxu0  ;;  %v452_v58 = vadd.f32 %v927_v23, %v204_v35  ;;  %v464_v59 = vadd.f32 %v927_v23, %v964_v0  ;;  %v605_v60 = vadd.f32 %v604_v49, %v546_v45  ;;  %v453_v62 = vadd.f32 %v929_v24, %v206_v46  ;;  %v246_v29 = vpop.f32.mrf.mxu1 }
  0xeb   :  { %v547_v61 = vsel %vm483_vm15, %v451_v39, %v515_v53  ;;  %v465_v63 = vadd.f32 %v929_v24, %v236_v17  ;;  %v676_v1 = vmul.f32 %v546_v45, %v546_v45  ;;  %v1031_v2 = vsel %vm495_vm0, %v463_v40, %v527_v57 }
  0xec   :  { %579 = vst [vmem:[%s1155_s3 + $0x48] sm:$0xff] %v547_v61  ;;  %vm484_vm1 = vcmp.ge.f32.partialorder %v452_v58, 0.0  ;;  %v454_v3 = vadd.f32 %v927_v23, %v210_v54  ;;  %v212_v4 = vpop.f32.mrf.mxu0  ;;  %v677_v5 = vmul.f32 %v547_v61, %v547_v61  ;;  %591 = vst [vmem:[%s1155_s3 + $0xa8] sm:$0xff] %v1031_v2  ;;  %v516_v0 = vmul.f32 0.2, %v452_v58  ;;  %v250_v46 = vpop.f32.mrf.mxu1 }
  0xed   :  { %vm496_vm2 = vcmp.ge.f32.partialorder %v464_v59, 0.0  ;;  %v528_v8 = vmul.f32 0.2, %v464_v59  ;;  %v723_v11 = vadd.f32 %v722_v47, %v675_v56  ;;  %vm485_vm3 = vcmp.ge.f32.partialorder %v453_v62, 0.0 }
  0xee   :  { %v517_v12 = vmul.f32 0.2, %v453_v62  ;;  %vm497_vm4 = vcmp.ge.f32.partialorder %v465_v63, 0.0  ;;  %v1040_v13 = vmul.f32 %v1017_v50, %v1017_v50  ;;  %v548_v14 = vsel %vm484_vm1, %v452_v58, %v516_v0  ;;  %v214_v22 = vpop.f32.mrf.mxu0 }
  0xef   :  { %v1042_v15 = vsel %vm496_vm2, %v464_v59, %v528_v8  ;;  %v529_v16 = vmul.f32 0.2, %v465_v63  ;;  %v703_v17 = vadd.f32 %v702_v51, %v676_v1  ;;  %v626_v20 = vadd.f32 %v625_v52, %v547_v61  ;;  %580 = vst [vmem:[%s1155_s3 + $0x50] sm:$0xff] %v548_v14  ;;  %v252_v1 = vpop.f32.mrf.mxu1 }
  0xf0   :  { %592 = vst [vmem:[%s1155_s3 + $0xb0] sm:$0xff] %v1042_v15  ;;  %v549_v21 = vsel %vm485_vm3, %v453_v62, %v517_v12  ;;  %vm486_vm5 = vcmp.ge.f32.partialorder %v454_v3, 0.0  ;;  %v724_v25 = vadd.f32 %v723_v11, %v677_v5  ;;  %v606_v26 = vadd.f32 %v605_v60, %v548_v14  ;;  %v216_v56 = vpop.f32.mrf.mxu0 }
  0xf1   :  { %581 = vst [vmem:[%s1155_s3 + $0x58] sm:$0xff] %v549_v21  ;;  %v1054_v27 = vsel %vm497_vm4, %v465_v63, %v529_v16  ;;  %v518_v28 = vmul.f32 0.2, %v454_v3  ;;  %v678_v30 = vmul.f32 %v548_v14, %v548_v14  ;;  %v1058_v31 = vmul.f32 %v1042_v15, %v1042_v15 }
  0xf2   :  { %593 = vst [vmem:[%s1155_s3 + $0xb8] sm:$0xff] %v1054_v27  ;;  %v466_v32 = vadd.f32 %v927_v23, %v995_v36  ;;  %v455_v33 = vadd.f32 %v929_v24, %v212_v4  ;;  %v627_v34 = vadd.f32 %v626_v20, %v549_v21  ;;  %v467_v37 = vadd.f32 %v929_v24, %v242_v55 }
  0xf3   :  { %v550_v35 = vsel %vm486_vm5, %v454_v3, %v518_v28  ;;  %v456_v39 = vadd.f32 %v927_v23, %v214_v22  ;;  %v679_v40 = vmul.f32 %v549_v21, %v549_v21  ;;  %v704_v47 = vadd.f32 %v703_v17, %v678_v30  ;;  %v254_v22 = vpop.f32.mrf.mxu1 }
  0xf4   :  { %582 = vst [vmem:[%s1155_s3 + $0x60] sm:$0xff] %v550_v35  ;;  %v680_v42 = vmul.f32 %v550_v35, %v550_v35  ;;  %vm498_vm6 = vcmp.ge.f32.partialorder %v466_v32, 0.0  ;;  %v530_v43 = vmul.f32 0.2, %v466_v32  ;;  %vm487_vm7 = vcmp.ge.f32.partialorder %v455_v33, 0.0 }
  0xf5   :  { %v519_v45 = vmul.f32 0.2, %v455_v33  ;;  %vm499_vm8 = vcmp.ge.f32.partialorder %v467_v37, 0.0  ;;  %v531_v36 = vmul.f32 0.2, %v467_v37  ;;  %vm488_vm9 = vcmp.ge.f32.partialorder %v456_v39, 0.0 }
  0xf6   :  { %v1072_v49 = vsel %vm498_vm6, %v466_v32, %v530_v43  ;;  %v520_v51 = vmul.f32 0.2, %v456_v39  ;;  %v607_v52 = vadd.f32 %v606_v26, %v550_v35  ;;  %v468_v55 = vadd.f32 %v927_v23, %v244_v9 }
  0xf7   :  { %594 = vst [vmem:[%s1155_s3 + $0xc0] sm:$0xff] %v1072_v49  ;;  %v551_v53 = vsel %vm487_vm7, %v455_v33, %v519_v45  ;;  %v1078_v54 = vsel %vm499_vm8, %v467_v37, %v531_v36  ;;  %v725_v57 = vadd.f32 %v724_v25, %v679_v40  ;;  %v705_v58 = vadd.f32 %v704_v47, %v680_v42 }
  0xf8   :  { %583 = vst [vmem:[%s1155_s3 + $0x68] sm:$0xff] %v551_v53  ;;  %v681_v59 = vmul.f32 %v551_v53, %v551_v53  ;;  %595 = vst [vmem:[%s1155_s3 + $0xc8] sm:$0xff] %v1078_v54  ;;  %v552_v60 = vsel %vm488_vm9, %v456_v39, %v520_v51  ;;  %vm500_vm10 = vcmp.ge.f32.partialorder %v468_v55, 0.0  ;;  %v532_v63 = vmul.f32 0.2, %v468_v55 }
  0xf9   :  { %584 = vst [vmem:[%s1155_s3 + $0x70] sm:$0xff] %v552_v60  ;;  %v608_v61 = vadd.f32 %v607_v52, %v552_v60  ;;  %v682_v62 = vmul.f32 %v552_v60, %v552_v60  ;;  %v628_v3 = vadd.f32 %v627_v34, %v551_v53  ;;  %v457_v4 = vadd.f32 %v929_v24, %v216_v56 }
  0xfa   :  { %v469_v5 = vadd.f32 %v929_v24, %v246_v29  ;;  %v470_v0 = vadd.f32 %v927_v23, %v250_v46  ;;  %v564_v11 = vsel %vm500_vm10, %v468_v55, %v532_v63  ;;  %v471_v12 = vadd.f32 %v929_v24, %v252_v1 }
  0xfb   :  { %v609_v8 = vadd.f32 %v608_v61, %v939_v41  ;;  %v706_v9 = vadd.f32 %v705_v58, %v682_v62  ;;  %v726_v14 = vadd.f32 %v725_v57, %v681_v59  ;;  %596 = vst [vmem:[%s1155_s3 + $0xd0] sm:$0xff] %v564_v11  ;;  %vm489_vm11 = vcmp.ge.f32.partialorder %v457_v4, 0.0 }
  0xfc   :  { %v521_v16 = vmul.f32 0.2, %v457_v4  ;;  %vm501_vm12 = vcmp.ge.f32.partialorder %v469_v5, 0.0  ;;  %v533_v21 = vmul.f32 0.2, %v469_v5  ;;  %vm502_vm13 = vcmp.ge.f32.partialorder %v470_v0, 0.0 }
  0xfd   :  { %v610_v17 = vadd.f32 %v609_v8, %v975_v7  ;;  %v707_v20 = vadd.f32 %v706_v9, %v972_v6  ;;  %v534_v25 = vmul.f32 0.2, %v470_v0  ;;  %vm503_vm14 = vcmp.ge.f32.partialorder %v471_v12, 0.0 }
  0xfe   :  { %v553_v41 = vsel %vm489_vm11, %v457_v4, %v521_v16  ;;  %v535_v26 = vmul.f32 0.2, %v471_v12  ;;  %v565_v7 = vsel %vm501_vm12, %v469_v5, %v533_v21  ;;  %v472_v34 = vadd.f32 %v927_v23, %v254_v22  ;;  %v256_v23 = vpop.f32.mrf.mxu1 }
  0xff   :  { %v708_v28 = vadd.f32 %v707_v20, %v1003_v44  ;;  %v611_v29 = vadd.f32 %v610_v17, %v1017_v50  ;;  %585 = vst [vmem:[%s1155_s3 + $0x78] sm:$0xff] %v553_v41  ;;  %v629_v30 = vadd.f32 %v628_v3, %v553_v41  ;;  %v683_v32 = vmul.f32 %v553_v41, %v553_v41 }
 0x100   :  { %v566_v33 = vsel %vm502_vm13, %v470_v0, %v534_v25  ;;  %v567_v6 = vsel %vm503_vm14, %v471_v12, %v535_v26  ;;  %597 = vst [vmem:[%s1155_s3 + $0xd8] sm:$0xff] %v565_v7  ;;  %v687_v50 = vmul.f32 %v997_v38, %v997_v38  ;;  %vm504_vm15 = vcmp.ge.f32.partialorder %v472_v34, 0.0 }
 0x101   :  { %v612_v35 = vadd.f32 %v611_v29, %v1042_v15  ;;  %v709_v37 = vadd.f32 %v708_v28, %v1040_v13  ;;  %v630_v39 = vadd.f32 %v629_v30, %v949_v48  ;;  %v727_v44 = vadd.f32 %v726_v14, %v683_v32  ;;  %598 = vst [vmem:[%s1155_s3 + $0xe0] sm:$0xff] %v566_v33 }
 0x102   :  { %599 = vst [vmem:[%s1155_s3 + $0xe8] sm:$0xff] %v567_v6  ;;  %v689_v48 = vmul.f32 %v1031_v2, %v1031_v2  ;;  %v692_v13 = vmul.f32 %v1072_v49, %v1072_v49  ;;  %v691_v45 = vmul.f32 %v1054_v27, %v1054_v27  ;;  %v694_v36 = vmul.f32 %v564_v11, %v564_v11 }
 0x103   :  { %v613_v15 = vadd.f32 %v612_v35, %v1072_v49  ;;  %v710_v40 = vadd.f32 %v709_v37, %v1058_v31  ;;  %v631_v42 = vadd.f32 %v630_v39, %v997_v38  ;;  %v728_v43 = vadd.f32 %v727_v44, %v979_v10 }
 0x104   :  { %v536_v46 = vmul.f32 0.2, %v472_v34  ;;  %v473_v47 = vadd.f32 %v929_v24, %v256_v23  ;;  %v696_v56 = vmul.f32 %v566_v33, %v566_v33  ;;  %v693_v24 = vmul.f32 %v1078_v54, %v1078_v54 }
 0x105   :  { %v614_v51 = vadd.f32 %v613_v15, %v564_v11  ;;  %v711_v52 = vadd.f32 %v710_v40, %v692_v13  ;;  %v729_v53 = vadd.f32 %v728_v43, %v687_v50  ;;  %v632_v55 = vadd.f32 %v631_v42, %v1031_v2 }
 0x106   :  { %v568_v49 = vsel %vm504_vm15, %v472_v34, %v536_v46  ;;  %vm505_vm0 = vcmp.ge.f32.partialorder %v473_v47, 0.0  ;;  %v537_v31 = vmul.f32 0.2, %v473_v47  ;;  %v697_v0 = vmul.f32 %v567_v6, %v567_v6 }
 0x107   :  { %v712_v57 = vadd.f32 %v711_v52, %v694_v36  ;;  %v633_v38 = vadd.f32 %v632_v55, %v1054_v27  ;;  %v730_v10 = vadd.f32 %v729_v53, %v689_v48  ;;  %v615_v58 = vadd.f32 %v614_v51, %v566_v33  ;;  %600 = vst [vmem:[%s1155_s3 + $0xf0] sm:$0xff] %v568_v49 }
 0x108   :  { %v698_v59 = vmul.f32 %v568_v49, %v568_v49  ;;  %v569_v60 = vsel %vm505_vm0, %v473_v47, %v537_v31  ;;  %v695_v27 = vmul.f32 %v565_v7, %v565_v7  ;;  %v831_v28 = vmov 1966171168  }
 0x109   :  { %v634_v2 = vadd.f32 %v633_v38, %v1078_v54  ;;  %v731_v61 = vadd.f32 %v730_v10, %v691_v45  ;;  %v713_v62 = vadd.f32 %v712_v57, %v696_v56  ;;  %v616_v63 = vadd.f32 %v615_v58, %v568_v49  ;;  %601 = vst [vmem:[%s1155_s3 + $0xf8] sm:$0xff] %v569_v60 }
 0x10a   :  { %v699_v14 = vmul.f32 %v569_v60, %v569_v60  ;;  %v648_v29 = vunpack.c.l.s4 %v831_v28  ;;  %vm664_vm1 = vcmp.lt.s32.totalorder %v432_v18, 256 }
 0x10b   :  { %v635_v1 = vadd.f32 %v634_v2, %v565_v7  ;;  %v732_v3 = vadd.f32 %v731_v61, %v693_v24  ;;  %v617_v4 = vrot.slane %v616_v63, 4  ;;  %v714_v5 = vadd.f32 %v713_v62, %v698_v59 }
 0x10c   :  { %v649_v35 = vunpack.c.0.s8 %v648_v29 }
 0x10d   :  { %v733_v8 = vadd.f32 %v732_v3, %v695_v27  ;;  %v636_v9 = vadd.f32 %v635_v1, %v567_v6  ;;  %v618_v11 = vadd.f32 %v617_v4, %v616_v63  ;;  %v715_v12 = vrot.slane %v714_v5, 4 }
 0x10e   :  { %v652_v13 = vsub.s32 %v649_v35, %v920_v19 }
 0x10f   :  { %v734_v16 = vadd.f32 %v733_v8, %v697_v0  ;;  %v619_v54 = vrot.slane %v618_v11, 2  ;;  %v716_v17 = vadd.f32 %v715_v12, %v714_v5  ;;  %v637_v20 = vadd.f32 %v636_v9, %v569_v60 }
 0x111   :  { %v717_v21 = vrot.slane %v716_v17, 2  ;;  %v638_v22 = vrot.slane %v637_v20, 4  ;;  %v735_v41 = vadd.f32 %v734_v16, %v699_v14  ;;  %v620_v25 = vadd.f32 %v619_v54, %v618_v11 }
 0x113   :  { %v639_v26 = vadd.f32 %v638_v22, %v637_v20  ;;  %v736_v30 = vrot.slane %v735_v41, 4  ;;  %v718_v32 = vadd.f32 %v717_v21, %v716_v17  ;;  %v621_v34 = vrot.slane %v620_v25, 1 }
 0x115   :  { %v640_v7 = vrot.slane %v639_v26, 2  ;;  %v737_v33 = vadd.f32 %v736_v30, %v735_v41  ;;  %v719_v39 = vrot.slane %v718_v32, 1  ;;  %v622_v50 = vadd.f32 %v621_v34, %v620_v25 }
 0x117   :  { %v641_v6 = vadd.f32 %v640_v7, %v639_v26  ;;  %v738_v37 = vrot.slane %v737_v33, 2  ;;  %v720_v40 = vadd.f32 %v719_v39, %v718_v32 }
 0x119   :  { %v642_v44 = vrot.slane %v641_v6, 1  ;;  %v739_v23 = vadd.f32 %v738_v37, %v737_v33 }
 0x11b   :  { %v643_v48 = vadd.f32 %v642_v44, %v641_v6  ;;  %v740_v15 = vrot.slane %v739_v23, 1 }
 0x11d   :  { %v646_v42 = vcombine.low %v622_v50, %v643_v48  ;;  %v741_v43 = vadd.f32 %v740_v15, %v739_v23 }
 0x11f   :  { %v653_v45 = vrot.slane %v646_v42, %v652_v13  ;;  %v744_v36 = vcombine.low %v720_v40, %v741_v43 }
 0x121   :  { %v660_v46 = vrot.slane %v653_v45, %v652_v13  ;;  %v751_v47 = vrot.slane %v744_v36, %v652_v13 }
 0x123   :  { %666 = vst.msk [vmem:[%s1153_s4] ss:$8 sm:$0x3] %vm664_vm1, %v660_v46  ;;  %v758_v51 = vrot.slane %v751_v47, %v652_v13 }
 0x125   :  { %797 = vst.msk [vmem:[%s1153_s4 + $0x1] ss:$8 sm:$0x3] %vm664_vm1, %v758_v51 }

// kernel: da_feature_discriminator_v2.4
= control target key start
LH: loop header
LB: loop body
LE: loop exit
PB: predicated region body
PF: predicated region fallthrough
CT: control target
= control target key end

     0   :  { %s1150_s15 = smov 0   ;;  %s1152_s16 = smov 0   ;;  %s1334_s0 = inlined_call_operand.vmem [shape: bf16[32,4096], index: 0, kind: input, shape index: {}]   ;;  %s1335_s1 = inlined_call_operand.vmem [shape: bf16[4096,128], index: 1, kind: input, shape index: {}]   ;;  %s1336_s2 = inlined_call_operand.vmem [shape: f32[1,128], index: 2, kind: input, shape index: {}]   ;;  %s1337_s3 = inlined_call_operand.vmem [shape: f32[32,128], index: 3, kind: output, shape index: {0}]   ;;  %s1338_s4 = inlined_call_operand.vmem [shape: f32[1,8,128], index: 4, kind: output, shape index: {1}]  }
   0x1   :  { %s1154_s17 = smov 0   ;;  %s1156_s18 = smov 0  }
   0x2   :  { %s1158_s19 = smov 0  }
   0x3 LB: > { %s24_s20 = sadd.s32 1, %s1118_s18  ;;  %p43_p1 = scmp.ne.s32.totalorder %s1110_s16, %s1106_s15  ;;  %s1122_s19 = sphi %s1158_s19, %s15_s19   ;;  %s1118_s18 = sphi %s1156_s18, %s1342_s18   ;;  %s1114_s17 = sphi %s1154_s17, %s1341_s17   ;;  %s1110_s16 = sphi %s1152_s16, %s1340_s16   ;;  %s1106_s15 = sphi %s1150_s15, %s1339_s15  }
   0x4   : > { %p25_p0 = scmp.ge.s32.totalorder %s24_s20, 8  ;;  %p44_p2 = scmp.eq.s32.totalorder %s1122_s19, 0 }
   0x5   : > { %s36_s22 = sadd.s32 1, %s1110_s16  ;;  %p885_p5 = scmp.ge.s32.totalorder %s1122_s19, 8 }
   0x6   : > { %s1344_s20 = smov (%p25_p0, %s24_s20), 0  ;;  %p45_p3 = por %p44_p2, %p43_p1 }
   0x7   : > { %s32_s21 = ssub.s32 %s1118_s18, %s1344_s20  ;;  %171 = sbr.rel (%p885_p5) target bundleno = 20 (0x14), region = 20 }
   0x8   : > { %p34_p4 = scmp.eq.s32.totalorder %s32_s21, 0 }
   0xa   : > { %s1185_s23 = scalar_select %p34_p4, %s1110_s16, %s36_s22  }
   0xc   : > { %174 = sbr.rel (!%p45_p3) target bundleno = 20 (0x14), region = 24  ;;  %s176_s24 = sand.u32 (%p45_p3), 1, %s1110_s16  }
   0xd   : > { %s942_s25 = sshll.u32 (%p45_p3), %s1118_s18, 4  ;;  %s886_s26 = sshll.u32 (%p45_p3), %s176_s24, 6 }
   0xe   : > { %s184_s29 = scalar_lea.vmem (%p45_p3), %s1334_s0, %s942_s25  ;;  %s178_s30 = scalar_lea.vmem (%p45_p3), [#allocation2], %s886_s26 }
   0xf   : > { %v197_v0 = vld [vmem:[%s184_s29] sm:$0xff] (%p45_p3)  ;;  %v199_v1 = vld [vmem:[%s184_s29 + $0x8] sm:$0xff] (%p45_p3) }
  0x10   : > { %v201_v2 = vld [vmem:[%s184_s29 + $0x80] sm:$0xff] (%p45_p3)  ;;  %198 = vst [vmem:[%s178_s30] sm:$0xff] (%p45_p3), %v197_v0  ;;  %200 = vst [vmem:[%s178_s30 + $0x8] sm:$0xff] (%p45_p3), %v199_v1  ;;  %v203_v3 = vld [vmem:[%s184_s29 + $0x88] sm:$0xff] (%p45_p3) }
  0x11   : > { %202 = vst [vmem:[%s178_s30 + $0x10] sm:$0xff] %v201_v2  ;;  %v205_v4 = vld [vmem:[%s184_s29 + $0x100] sm:$0xff]  ;;  %v207_v5 = vld [vmem:[%s184_s29 + $0x108] sm:$0xff]  ;;  %204 = vst [vmem:[%s178_s30 + $0x18] sm:$0xff] %v203_v3 }
  0x12   : > { %206 = vst [vmem:[%s178_s30 + $0x20] sm:$0xff] %v205_v4  ;;  %208 = vst [vmem:[%s178_s30 + $0x28] sm:$0xff] %v207_v5  ;;  %v209_v6 = vld [vmem:[%s184_s29 + $0x180] sm:$0xff]  ;;  %v211_v7 = vld [vmem:[%s184_s29 + $0x188] sm:$0xff] }
  0x13   : > { %210 = vst [vmem:[%s178_s30 + $0x30] sm:$0xff] %v209_v6  ;;  %212 = vst [vmem:[%s178_s30 + $0x38] sm:$0xff] %v211_v7 }
  0x14 PF: > { %p889_p6 = scmp.ge.s32.totalorder %s1122_s19, 1  ;;  %p226_p7 = scmp.lt.s32.totalorder %s1122_s19, 9 }
  0x16   : > { %p227_p8 = pnand %p889_p6, %p226_p7 }
  0x17   : > { %s891_s5 = sshll.u32 (!%p227_p8), %s1114_s17, 6  ;;  %s233_s6 = sand.u32 (!%p227_p8), 1, %s1106_s15  }
  0x18   : > { %230 = sbr.rel (%p227_p8) target bundleno = 326 (0x146), region = 51  ;;  %p270_p9 = scmp.lt.s32.totalorder (!%p227_p8), %s891_s5, 511 }
  0x19   : > { %s890_s7 = sshll.u32 (!%p227_p8), %s233_s6, 6  ;;  %p933_p10 = scmp.ne.s32.totalorder (!%p227_p8), %s1114_s17, 0 }
  0x1a   : > { %s1197_s8 = scalar_lea.vmem (!%p227_p8), [#allocation2], %s890_s7 }
  0x1d   : > { %s1346_s5 = smov (!%p270_p9, %s891_s5), 511  ;;  %v1074_v8 = vld [vmem:[%s1197_s8 + $0x4] ss:$16 sps:$4 sm:$0xff]   ;;  %v1077_v9 = vld [vmem:[%s1197_s8 + $0xc] ss:$16 sps:$4 sm:$0xff]  }
  0x1e   : > { %s892_s9 = sshll.u32 %s1346_s5, 2  ;;  %622 = vmatprep.mubr.bf16.mxu0 %v1074_v8  ;;  %671 = vmatprep.mubr.bf16.mxu1 %v1077_v9  ;;  %v1072_v40 = vld [vmem:[%s1197_s8] ss:$16 sps:$4 sm:$0xff]   ;;  %v1075_v43 = vld [vmem:[%s1197_s8 + $0x8] ss:$16 sps:$4 sm:$0xff]  }
  0x1f   : > { %s1204_s12 = scalar_lea.vmem %s1335_s1, %s892_s9  ;;  %v1078_v44 = vld [vmem:[%s1197_s8 + $0x24] ss:$16 sps:$4 sm:$0xff]   ;;  %v1080_v45 = vld [vmem:[%s1197_s8 + $0x2c] ss:$16 sps:$4 sm:$0xff]   ;;  %v1082_v46 = vld [vmem:[%s1197_s8 + $0x20] ss:$16 sps:$4 sm:$0xff]  }
  0x20   : > { %v1040_v10 = vld [vmem:[%s1204_s12 + $0x78] sm:$0xff]   ;;  %v1044_v14 = vld [vmem:[%s1204_s12 + $0x70] sm:$0xff]   ;;  %v1048_v18 = vld [vmem:[%s1204_s12 + $0x68] sm:$0xff]  }
  0x21   : > { %v1041_v11 = vld [vmem:[%s1204_s12 + $0xf8] sm:$0xff]   ;;  %943 = vmatprep.subr.bf16.mxu0 %v1040_v10  ;;  %v1045_v15 = vld [vmem:[%s1204_s12 + $0xf0] sm:$0xff]   ;;  %v1049_v19 = vld [vmem:[%s1204_s12 + $0xe8] sm:$0xff]  }
  0x22   : > { %v1042_v12 = vld [vmem:[%s1204_s12 + $0x38] sm:$0xff]   ;;  %971 = vmatprep.subr.bf16.mxu1 %v1041_v11  ;;  %v1046_v16 = vld [vmem:[%s1204_s12 + $0x30] sm:$0xff]   ;;  %v1050_v20 = vld [vmem:[%s1204_s12 + $0x28] sm:$0xff]  }
  0x23   : > { %v1043_v13 = vld [vmem:[%s1204_s12 + $0xb8] sm:$0xff]   ;;  %944 = vmatpush3.bf16.msra.mxu0 %v1042_v12  ;;  %v1047_v17 = vld [vmem:[%s1204_s12 + $0xb0] sm:$0xff]   ;;  %v1051_v21 = vld [vmem:[%s1204_s12 + $0xa8] sm:$0xff]  }
  0x24   : > { %972 = vmatpush3.bf16.msra.mxu1 %v1043_v13  ;;  %945 = vmatprep.subr.bf16.mxu0 %v1044_v14  ;;  %v1052_v22 = vld [vmem:[%s1204_s12 + $0x60] sm:$0xff]   ;;  %v1056_v26 = vld [vmem:[%s1204_s12 + $0x58] sm:$0xff]   ;;  %v1060_v30 = vld [vmem:[%s1204_s12 + $0x50] sm:$0xff]  }
  0x25   : > { %973 = vmatprep.subr.bf16.mxu1 %v1045_v15  ;;  %v1053_v23 = vld [vmem:[%s1204_s12 + $0xe0] sm:$0xff]   ;;  %v1057_v27 = vld [vmem:[%s1204_s12 + $0xd8] sm:$0xff]   ;;  %v1061_v31 = vld [vmem:[%s1204_s12 + $0xd0] sm:$0xff]  }
  0x26   : > { %v1054_v24 = vld [vmem:[%s1204_s12 + $0x20] sm:$0xff]   ;;  %v1058_v28 = vld [vmem:[%s1204_s12 + $0x18] sm:$0xff]   ;;  %v1062_v32 = vld [vmem:[%s1204_s12 + $0x10] sm:$0xff]  }
  0x27   : > { %946 = vmatpush3.bf16.msra.mxu0 %v1046_v16  ;;  %v1055_v25 = vld [vmem:[%s1204_s12 + $0xa0] sm:$0xff]   ;;  %v1059_v29 = vld [vmem:[%s1204_s12 + $0x98] sm:$0xff]   ;;  %v1063_v33 = vld [vmem:[%s1204_s12 + $0x90] sm:$0xff]  }
  0x28   : > { %974 = vmatpush3.bf16.msra.mxu1 %v1047_v17  ;;  %947 = vmatprep.subr.bf16.mxu0 %v1048_v18  ;;  %v1064_v34 = vld [vmem:[%s1204_s12 + $0x48] sm:$0xff]   ;;  %v1068_v38 = vld [vmem:[%s1204_s12 + $0x40] sm:$0xff]  }
  0x29   : > { %975 = vmatprep.subr.bf16.mxu1 %v1049_v19  ;;  %v1065_v35 = vld [vmem:[%s1204_s12 + $0xc8] sm:$0xff]   ;;  %v1069_v39 = vld [vmem:[%s1204_s12 + $0xc0] sm:$0xff]  }
  0x2a   : > { %v1066_v36 = vld [vmem:[%s1204_s12 + $0x8] sm:$0xff]   ;;  %v1070_v41 = vld [vmem:[%s1204_s12] sm:$0xff]  }
  0x2b   : > { %948 = vmatpush3.bf16.msra.mxu0 %v1050_v20  ;;  %v1067_v37 = vld [vmem:[%s1204_s12 + $0x88] sm:$0xff]   ;;  %v1071_v42 = vld [vmem:[%s1204_s12 + $0x80] sm:$0xff]  }
  0x2c   : > { %976 = vmatpush3.bf16.msra.mxu1 %v1051_v21  ;;  %949 = vmatprep.subr.bf16.mxu0 %v1052_v22  ;;  %v1083_v47 = vld [vmem:[%s1197_s8 + $0x28] ss:$16 sps:$4 sm:$0xff]  }
  0x2d   : > { %977 = vmatprep.subr.bf16.mxu1 %v1053_v23 }
  0x2f   : > { %950 = vmatpush3.bf16.msra.mxu0 %v1054_v24 }
  0x30   : > { %978 = vmatpush3.bf16.msra.mxu1 %v1055_v25  ;;  %951 = vmatprep.subr.bf16.mxu0 %v1056_v26 }
  0x31   : > { %979 = vmatprep.subr.bf16.mxu1 %v1057_v27 }
  0x33   : > { %952 = vmatpush3.bf16.msra.mxu0 %v1058_v28 }
  0x34   : > { %980 = vmatpush3.bf16.msra.mxu1 %v1059_v29  ;;  %953 = vmatprep.subr.bf16.mxu0 %v1060_v30 }
  0x35   : > { %981 = vmatprep.subr.bf16.mxu1 %v1061_v31 }
  0x37   : > { %954 = vmatpush3.bf16.msra.mxu0 %v1062_v32 }
  0x38   : > { %982 = vmatpush3.bf16.msra.mxu1 %v1063_v33  ;;  %955 = vmatprep.subr.bf16.mxu0 %v1064_v34 }
  0x39   : > { %983 = vmatprep.subr.bf16.mxu1 %v1065_v35 }
  0x3b   : > { %956 = vmatpush3.bf16.msra.mxu0 %v1066_v36 }
  0x3c   : > { %984 = vmatpush3.bf16.msra.mxu1 %v1067_v37  ;;  %957 = vmatprep.subr.bf16.mxu0 %v1068_v38 }
  0x3d   : > { %985 = vmatprep.subr.bf16.mxu1 %v1069_v39 }
  0x3f   : > { %958 = vmatpush3.bf16.msra.mxu0 %v1070_v41 }
  0x40   : > { %986 = vmatpush3.bf16.msra.mxu1 %v1071_v42 }
  0x42   : > { %623 = vmatmul.mubr.bf16.vlgmr.msra.gmra.mxu0 %v1072_v40 }
  0x43   : > { %672 = vmatmul.mubr.bf16.vlgmr.msra.gmra.mxu1 %v1075_v43  ;;  %630 = vmatprep.mubr.bf16.mxu0 %v1078_v44 }
  0x44   : > { %679 = vmatprep.mubr.bf16.mxu1 %v1080_v45 }
  0x4a   : > { %631 = vmatmul.mubr.bf16.gmra.mxu0 %v1082_v46 }
  0x4b   : > { %680 = vmatmul.mubr.bf16.gmra.mxu1 %v1083_v47 }
 0x102   : > { %v959_v48 = vpop.f32.mrf.mxu0 }
 0x103   : > { %v987_v49 = vpop.f32.mrf.mxu1 }
 0x104   : > { %v960_v50 = vpop.f32.mrf.mxu0 }
 0x105   : > { %v961_v51 = vadd.f32 %v960_v50, %v959_v48  ;;  %v988_v52 = vpop.f32.mrf.mxu1 }
 0x106   : > { %v989_v53 = vadd.f32 %v988_v52, %v987_v49  ;;  %v962_v54 = vpop.f32.mrf.mxu0 }
 0x107   : > { %v990_v55 = vpop.f32.mrf.mxu1 }
 0x108   : > { %v674_v56 = vadd.f32 %v989_v53, %v961_v51  ;;  %v963_v57 = vpop.f32.mrf.mxu0 }
 0x109   : > { %v964_v58 = vadd.f32 %v963_v57, %v962_v54  ;;  %v991_v59 = vpop.f32.mrf.mxu1 }
 0x10a   : > { %v992_v60 = vadd.f32 %v991_v59, %v990_v55  ;;  %v965_v61 = vpop.f32.mrf.mxu0 }
 0x10b   : > { %v993_v62 = vpop.f32.mrf.mxu1 }
 0x10c   : > { %v677_v63 = vadd.f32 %v992_v60, %v964_v58  ;;  %v966_v0 = vpop.f32.mrf.mxu0 }
 0x10d   : > { %v967_v1 = vadd.f32 %v966_v0, %v965_v61  ;;  %v994_v2 = vpop.f32.mrf.mxu1 }
 0x10e   : > { %v995_v3 = vadd.f32 %v994_v2, %v993_v62  ;;  %v968_v4 = vpop.f32.mrf.mxu0 }
 0x10f   : > { %v996_v5 = vpop.f32.mrf.mxu1 }
 0x110   : > { %v682_v6 = vadd.f32 %v995_v3, %v967_v1  ;;  %v969_v7 = vpop.f32.mrf.mxu0  ;;  %691 = sbr.rel (%p933_p10) target bundleno = 279 (0x117), region = 59 }
 0x111   : > { %v970_v8 = vadd.f32 %v969_v7, %v968_v4  ;;  %v997_v9 = vpop.f32.mrf.mxu1 }
 0x112   : > { %v998_v10 = vadd.f32 %v997_v9, %v996_v5 }
 0x114   : > { %v685_v11 = vadd.f32 %v998_v10, %v970_v8 }
 0x115   : > { %692 = vst [vmem:[%s1337_s3] sm:$0xff] %v674_v56  ;;  %693 = vst [vmem:[%s1337_s3 + $0x8] sm:$0xff] %v677_v63 }
 0x116   : > { %694 = vst [vmem:[%s1337_s3 + $0x10] sm:$0xff] %v682_v6  ;;  %695 = vst [vmem:[%s1337_s3 + $0x18] sm:$0xff] %v685_v11 }
 0x117 PF: > { %p934_p11 = scmp.le.s32.totalorder %s1114_s17, 0 }
 0x119   : > { %699 = sbr.rel (%p934_p11) target bundleno = 291 (0x123), region = 63 }
 0x11e   : > { %v700_v12 = vld [vmem:[%s1337_s3] sm:$0xff]  ;;  %v701_v13 = vld [vmem:[%s1337_s3 + $0x8] sm:$0xff]  ;;  %v702_v14 = vld [vmem:[%s1337_s3 + $0x10] sm:$0xff] }
 0x11f   : > { %v704_v15 = vadd.f32 %v700_v12, %v674_v56  ;;  %v705_v16 = vadd.f32 %v701_v13, %v677_v63  ;;  %v706_v17 = vadd.f32 %v702_v14, %v682_v6  ;;  %v703_v18 = vld [vmem:[%s1337_s3 + $0x18] sm:$0xff] }
 0x120   : > { %v707_v19 = vadd.f32 %v703_v18, %v685_v11 }
 0x121   : > { %708 = vst [vmem:[%s1337_s3] sm:$0xff] %v704_v15  ;;  %709 = vst [vmem:[%s1337_s3 + $0x8] sm:$0xff] %v705_v16 }
 0x122   : > { %710 = vst [vmem:[%s1337_s3 + $0x10] sm:$0xff] %v706_v17  ;;  %711 = vst [vmem:[%s1337_s3 + $0x18] sm:$0xff] %v707_v19 }
 0x123 PF: > { %p935_p12 = scmp.ne.s32.totalorder %s1114_s17, 7 }
 0x125   : > { %715 = sbr.rel (%p935_p12) target bundleno = 326 (0x146), region = 67 }
 0x12a   : > { %v716_v20 = vld [vmem:[%s1337_s3] sm:$0xff]  ;;  %v717_v22 = vld [vmem:[%s1337_s3 + $0x8] sm:$0xff]  ;;  %v718_v25 = vld [vmem:[%s1337_s3 + $0x10] sm:$0xff]  ;;  %v1124_v27 = vmov 0.0  }
 0x12b   : > { %v936_v21 = vld [vmem:[%s1336_s2] ss:$0 sm:$0xff]  ;;  %v719_v26 = vld [vmem:[%s1337_s3 + $0x18] sm:$0xff]  ;;  %771 = vst [vmem:[%s1338_s4 + $0x2] sm:$0x3f] %v1124_v27 }
 0x12c   : > { %v727_v23 = vadd.f32 %v936_v21, %v716_v20  ;;  %v728_v24 = vadd.f32 %v936_v21, %v717_v22  ;;  %v729_v28 = vadd.f32 %v936_v21, %v718_v25  ;;  %v730_v29 = vadd.f32 %v936_v21, %v719_v26 }
 0x12e   : > { %vm731_vm0 = vcmp.ge.f32.partialorder %v727_v23, 0.0  ;;  %v735_v30 = vmul.f32 0.2, %v727_v23  ;;  %vm732_vm1 = vcmp.ge.f32.partialorder %v728_v24, 0.0  ;;  %v736_v31 = vmul.f32 0.2, %v728_v24 }
 0x12f   : > { %vm733_vm2 = vcmp.ge.f32.partialorder %v729_v28, 0.0  ;;  %v737_v32 = vmul.f32 0.2, %v729_v28  ;;  %vm734_vm3 = vcmp.ge.f32.partialorder %v730_v29, 0.0  ;;  %v738_v33 = vmul.f32 0.2, %v730_v29 }
 0x130   : > { %v739_v34 = vsel %vm731_vm0, %v727_v23, %v735_v30  ;;  %v740_v35 = vsel %vm732_vm1, %v728_v24, %v736_v31 }
 0x131   : > { %743 = vst [vmem:[%s1337_s3] sm:$0xff] %v739_v34  ;;  %v757_v36 = vmul.f32 %v739_v34, %v739_v34  ;;  %744 = vst [vmem:[%s1337_s3 + $0x8] sm:$0xff] %v740_v35  ;;  %v747_v37 = vadd.f32 %v740_v35, %v739_v34  ;;  %v758_v38 = vmul.f32 %v740_v35, %v740_v35 }
 0x132   : > { %v741_v39 = vsel %vm733_vm2, %v729_v28, %v737_v32  ;;  %v742_v41 = vsel %vm734_vm3, %v730_v29, %v738_v33 }
 0x133   : > { %745 = vst [vmem:[%s1337_s3 + $0x10] sm:$0xff] %v741_v39  ;;  %v759_v40 = vmul.f32 %v741_v39, %v741_v39  ;;  %v761_v42 = vadd.f32 %v758_v38, %v757_v36  ;;  %v748_v43 = vadd.f32 %v747_v37, %v741_v39  ;;  %746 = vst [vmem:[%s1337_s3 + $0x18] sm:$0xff] %v742_v41 }
 0x134   : > { %v760_v44 = vmul.f32 %v742_v41, %v742_v41 }
 0x135   : > { %v762_v45 = vadd.f32 %v761_v42, %v759_v40  ;;  %v749_v46 = vadd.f32 %v748_v43, %v742_v41 }
 0x137   : > { %v750_v47 = vrot.slane %v749_v46, 4  ;;  %v763_v48 = vadd.f32 %v762_v45, %v760_v44 }
 0x139   : > { %v751_v49 = vadd.f32 %v750_v47, %v749_v46  ;;  %v764_v50 = vrot.slane %v763_v48, 4 }
 0x13b   : > { %v752_v51 = vrot.slane %v751_v49, 2  ;;  %v765_v52 = vadd.f32 %v764_v50, %v763_v48 }
 0x13d   : > { %v753_v53 = vadd.f32 %v752_v51, %v751_v49  ;;  %v766_v54 = vrot.slane %v765_v52, 2 }
 0x13f   : > { %v754_v55 = vrot.slane %v753_v53, 1  ;;  %v767_v56 = vadd.f32 %v766_v54, %v765_v52 }
 0x141   : > { %v755_v57 = vadd.f32 %v754_v55, %v753_v53  ;;  %v768_v58 = vrot.slane %v767_v56, 1 }
 0x143   : > { %756 = vst [vmem:[%s1338_s4] sm:$0x1] %v755_v57  ;;  %v769_v59 = vadd.f32 %v768_v58, %v767_v56 }
 0x145   : > { %770 = vst [vmem:[%s1338_s4 + $0x1] sm:$0x1] %v769_v59 }
 0x146 PF: > { %s15_s19 = sadd.s32 1, %s1122_s19   ;;  %s1339_s15 = smov %s1110_s16 }
 0x147   : > { %p12_p13 = scmp.ge.s32.totalorder %s15_s19, 10   ;;  %s1340_s16 = smov %s1185_s23 }
 0x148   : > { %s1341_s17 = smov %s1118_s18  ;;  %s1342_s18 = smov %s1344_s20 }
 0x149   :  { %14 = sbr.rel (!%p12_p13) target bundleno = 3 (0x3), region = 117 }

// kernel: da_feature_discriminator_v2.5
= control target key start
LH: loop header
LB: loop body
LE: loop exit
PB: predicated region body
PF: predicated region fallthrough
CT: control target
= control target key end

     0   :  { %s967_s15 = smov 0   ;;  %s969_s16 = smov 0   ;;  %s1068_s0 = inlined_call_operand.vmem [shape: bf16[8,2048], index: 0, kind: input, shape index: {}]   ;;  %s1069_s1 = inlined_call_operand.vmem [shape: bf16[2048,128], index: 1, kind: input, shape index: {}]   ;;  %s1070_s2 = inlined_call_operand.vmem [shape: f32[1,128], index: 2, kind: input, shape index: {}]   ;;  %s1071_s3 = inlined_call_operand.vmem [shape: f32[8,128], index: 3, kind: output, shape index: {0}]   ;;  %s1072_s4 = inlined_call_operand.vmem [shape: f32[1,8,128], index: 4, kind: output, shape index: {1}]  }
   0x1   :  { %s971_s17 = smov 0  }
   0x2 LB: > { %s24_s18 = sadd.s32 1, %s935_s16  ;;  %p763_p0 = scmp.ge.s32.totalorder %s939_s17, 1  ;;  %s939_s17 = sphi %s971_s17, %s15_s17   ;;  %s935_s16 = sphi %s969_s16, %s1074_s16   ;;  %s931_s15 = sphi %s967_s15, %s1073_s15  }
   0x3   : > { %p25_p1 = scmp.ge.s32.totalorder %s24_s18, 4  ;;  %p195_p2 = scmp.lt.s32.totalorder %s939_s17, 5 }
   0x5   : > { %s1076_s18 = smov (%p25_p1, %s24_s18), 0  ;;  %p196_p3 = pnand %p763_p0, %p195_p2 }
   0x6   : > { %s766_s19 = sshll.u32 (!%p196_p3), %s931_s15, 6  ;;  %s764_s24 = sshll.u32 (!%p196_p3), %s931_s15, 2 }
   0x7   : > { %199 = sbr.rel (%p196_p3) target bundleno = 290 (0x122), region = 32  ;;  %p244_p4 = scmp.lt.s32.totalorder (!%p196_p3), %s766_s19, 255 }
   0x8   : > { %p236_p5 = scmp.lt.s32.totalorder (!%p196_p3), %s764_s24, 15  ;;  %p804_p6 = scmp.ne.s32.totalorder (!%p196_p3), %s931_s15, 0 }
   0xc   : > { %s1078_s19 = smov (!%p244_p4, %s766_s19), 255  ;;  %s1080_s24 = smov (!%p236_p5, %s764_s24), 15 }
   0xd   : > { %s767_s20 = sshll.u32 %s1078_s19, 2  ;;  %s765_s25 = sshll.u32 %s1080_s24, 2 }
   0xe   : > { %s991_s23 = scalar_lea.vmem %s1069_s1, %s767_s20  ;;  %s241_s28 = scalar_lea.vmem %s1068_s0, %s765_s25 }
   0xf   : > { %v881_v0 = vld [vmem:[%s991_s23 + $0x78] sm:$0xff]   ;;  %v885_v4 = vld [vmem:[%s991_s23 + $0x70] sm:$0xff]   ;;  %v889_v8 = vld [vmem:[%s991_s23 + $0x68] sm:$0xff]  }
  0x10   : > { %v882_v1 = vld [vmem:[%s991_s23 + $0xf8] sm:$0xff]   ;;  %812 = vmatprep.subr.bf16.mxu0 %v881_v0  ;;  %v886_v5 = vld [vmem:[%s991_s23 + $0xf0] sm:$0xff]   ;;  %v890_v9 = vld [vmem:[%s991_s23 + $0xe8] sm:$0xff]  }
  0x11   : > { %v883_v2 = vld [vmem:[%s991_s23 + $0x38] sm:$0xff]   ;;  %834 = vmatprep.subr.bf16.mxu1 %v882_v1  ;;  %v887_v6 = vld [vmem:[%s991_s23 + $0x30] sm:$0xff]   ;;  %v891_v10 = vld [vmem:[%s991_s23 + $0x28] sm:$0xff]  }
  0x12   : > { %v884_v3 = vld [vmem:[%s991_s23 + $0xb8] sm:$0xff]   ;;  %813 = vmatpush3.bf16.msra.mxu0 %v883_v2  ;;  %v888_v7 = vld [vmem:[%s991_s23 + $0xb0] sm:$0xff]   ;;  %v892_v11 = vld [vmem:[%s991_s23 + $0xa8] sm:$0xff]  }
  0x13   : > { %835 = vmatpush3.bf16.msra.mxu1 %v884_v3  ;;  %814 = vmatprep.subr.bf16.mxu0 %v885_v4  ;;  %v893_v12 = vld [vmem:[%s991_s23 + $0x60] sm:$0xff]   ;;  %v897_v16 = vld [vmem:[%s991_s23 + $0x58] sm:$0xff]   ;;  %v901_v20 = vld [vmem:[%s991_s23 + $0x50] sm:$0xff]  }
  0x14   : > { %836 = vmatprep.subr.bf16.mxu1 %v886_v5  ;;  %v894_v13 = vld [vmem:[%s991_s23 + $0xe0] sm:$0xff]   ;;  %v898_v17 = vld [vmem:[%s991_s23 + $0xd8] sm:$0xff]   ;;  %v902_v21 = vld [vmem:[%s991_s23 + $0xd0] sm:$0xff]  }
  0x15   : > { %v895_v14 = vld [vmem:[%s991_s23 + $0x20] sm:$0xff]   ;;  %v899_v18 = vld [vmem:[%s991_s23 + $0x18] sm:$0xff]   ;;  %v903_v22 = vld [vmem:[%s991_s23 + $0x10] sm:$0xff]  }
  0x16   : > { %815 = vmatpush3.bf16.msra.mxu0 %v887_v6  ;;  %v896_v15 = vld [vmem:[%s991_s23 + $0xa0] sm:$0xff]   ;;  %v900_v19 = vld [vmem:[%s991_s23 + $0x98] sm:$0xff]   ;;  %v904_v23 = vld [vmem:[%s991_s23 + $0x90] sm:$0xff]  }
  0x17   : > { %837 = vmatpush3.bf16.msra.mxu1 %v888_v7  ;;  %816 = vmatprep.subr.bf16.mxu0 %v889_v8  ;;  %v905_v24 = vld [vmem:[%s991_s23 + $0x48] sm:$0xff]   ;;  %v909_v28 = vld [vmem:[%s991_s23 + $0x40] sm:$0xff]  }
  0x18   : > { %838 = vmatprep.subr.bf16.mxu1 %v890_v9  ;;  %v906_v25 = vld [vmem:[%s991_s23 + $0xc8] sm:$0xff]   ;;  %v910_v29 = vld [vmem:[%s991_s23 + $0xc0] sm:$0xff]  }
  0x19   : > { %v907_v26 = vld [vmem:[%s991_s23 + $0x8] sm:$0xff]   ;;  %v911_v30 = vld [vmem:[%s991_s23] sm:$0xff]  }
  0x1a   : > { %817 = vmatpush3.bf16.msra.mxu0 %v891_v10  ;;  %v908_v27 = vld [vmem:[%s991_s23 + $0x88] sm:$0xff]   ;;  %v912_v31 = vld [vmem:[%s991_s23 + $0x80] sm:$0xff]  }
  0x1b   : > { %839 = vmatpush3.bf16.msra.mxu1 %v892_v11  ;;  %818 = vmatprep.subr.bf16.mxu0 %v893_v12  ;;  %v258_v32 = vld [vmem:[%s241_s28] sm:$0xff]  ;;  %v259_v33 = vld [vmem:[%s241_s28 + $0x8] sm:$0xff] }
  0x1c   : > { %840 = vmatprep.subr.bf16.mxu1 %v894_v13  ;;  %v768_v34 = vcombine.low %v258_v32, %v258_v32  ;;  %v769_v35 = vcombine.high %v258_v32, %v258_v32  ;;  %v770_v36 = vcombine.low %v259_v33, %v259_v33  ;;  %v771_v37 = vcombine.high %v259_v33, %v259_v33 }
  0x1e   : > { %819 = vmatpush3.bf16.msra.mxu0 %v895_v14  ;;  %562 = vmatprep.mubr.bf16.mxu0 %v769_v35 }
  0x1f   : > { %841 = vmatpush3.bf16.msra.mxu1 %v896_v15  ;;  %820 = vmatprep.subr.bf16.mxu0 %v897_v16 }
  0x20   : > { %842 = vmatprep.subr.bf16.mxu1 %v898_v17  ;;  %602 = vmatprep.mubr.bf16.mxu1 %v771_v37 }
  0x22   : > { %821 = vmatpush3.bf16.msra.mxu0 %v899_v18 }
  0x23   : > { %843 = vmatpush3.bf16.msra.mxu1 %v900_v19  ;;  %822 = vmatprep.subr.bf16.mxu0 %v901_v20 }
  0x24   : > { %844 = vmatprep.subr.bf16.mxu1 %v902_v21 }
  0x26   : > { %823 = vmatpush3.bf16.msra.mxu0 %v903_v22 }
  0x27   : > { %845 = vmatpush3.bf16.msra.mxu1 %v904_v23  ;;  %824 = vmatprep.subr.bf16.mxu0 %v905_v24 }
  0x28   : > { %846 = vmatprep.subr.bf16.mxu1 %v906_v25 }
  0x2a   : > { %825 = vmatpush3.bf16.msra.mxu0 %v907_v26 }
  0x2b   : > { %847 = vmatpush3.bf16.msra.mxu1 %v908_v27  ;;  %826 = vmatprep.subr.bf16.mxu0 %v909_v28 }
  0x2c   : > { %848 = vmatprep.subr.bf16.mxu1 %v910_v29 }
  0x2e   : > { %827 = vmatpush3.bf16.msra.mxu0 %v911_v30 }
  0x2f   : > { %849 = vmatpush3.bf16.msra.mxu1 %v912_v31 }
  0x31   : > { %563 = vmatmul.mubr.bf16.vlgmr.msra.gmra.mxu0 %v768_v34 }
  0x32   : > { %603 = vmatmul.mubr.bf16.vlgmr.msra.gmra.mxu1 %v770_v36 }
  0xf1   : > { %v828_v38 = vpop.f32.mrf.mxu0 }
  0xf2   : > { %v850_v39 = vpop.f32.mrf.mxu1 }
  0xf3   : > { %v829_v40 = vpop.f32.mrf.mxu0 }
  0xf4   : > { %v851_v41 = vpop.f32.mrf.mxu1  ;;  %v830_v42 = vadd.f32 %v829_v40, %v828_v38  ;;  %613 = sbr.rel (%p804_p6) target bundleno = 250 (0xfa), region = 36 }
  0xf5   : > { %v852_v43 = vadd.f32 %v851_v41, %v850_v39  ;;  %v831_v44 = vpop.f32.mrf.mxu0 }
  0xf6   : > { %v853_v45 = vpop.f32.mrf.mxu1 }
  0xf7   : > { %v605_v46 = vadd.f32 %v852_v43, %v830_v42  ;;  %v832_v47 = vpop.f32.mrf.mxu0 }
  0xf8   : > { %v854_v48 = vpop.f32.mrf.mxu1 }
  0xf9   : > { %614 = vst [vmem:[%s1071_s3] sm:$0xff] %v605_v46 }
  0xfa PF: > { %p805_p7 = scmp.le.s32.totalorder %s931_s15, 0 }
  0xfc   : > { %618 = sbr.rel (%p805_p7) target bundleno = 261 (0x105), region = 40 }
 0x101   : > { %v619_v49 = vld [vmem:[%s1071_s3] sm:$0xff] }
 0x102   : > { %v620_v50 = vadd.f32 %v619_v49, %v605_v46 }
 0x104   : > { %621 = vst [vmem:[%s1071_s3] sm:$0xff] %v620_v50 }
 0x105 PF: > { %p806_p8 = scmp.ne.s32.totalorder %s931_s15, 3 }
 0x107   : > { %625 = sbr.rel (%p806_p8) target bundleno = 290 (0x122), region = 44 }
 0x10c   : > { %v626_v51 = vld [vmem:[%s1071_s3] sm:$0xff]  ;;  %v941_v54 = vmov 0.0  }
 0x10d   : > { %v807_v52 = vld [vmem:[%s1070_s2] ss:$0 sm:$0xff]  ;;  %654 = vst [vmem:[%s1072_s4 + $0x2] sm:$0x3f] %v941_v54 }
 0x10e   : > { %v634_v53 = vadd.f32 %v807_v52, %v626_v51 }
 0x110   : > { %vm635_vm0 = vcmp.ge.f32.partialorder %v634_v53, 0.0  ;;  %v636_v55 = vmul.f32 0.2, %v634_v53 }
 0x112   : > { %v637_v56 = vsel %vm635_vm0, %v634_v53, %v636_v55 }
 0x113   : > { %638 = vst [vmem:[%s1071_s3] sm:$0xff] %v637_v56  ;;  %v639_v57 = vrot.slane %v637_v56, 4  ;;  %v646_v58 = vmul.f32 %v637_v56, %v637_v56 }
 0x115   : > { %v640_v59 = vadd.f32 %v639_v57, %v637_v56  ;;  %v647_v60 = vrot.slane %v646_v58, 4 }
 0x117   : > { %v641_v61 = vrot.slane %v640_v59, 2  ;;  %v648_v62 = vadd.f32 %v647_v60, %v646_v58 }
 0x119   : > { %v642_v63 = vadd.f32 %v641_v61, %v640_v59  ;;  %v649_v0 = vrot.slane %v648_v62, 2 }
 0x11b   : > { %v643_v1 = vrot.slane %v642_v63, 1  ;;  %v650_v2 = vadd.f32 %v649_v0, %v648_v62 }
 0x11d   : > { %v644_v3 = vadd.f32 %v643_v1, %v642_v63  ;;  %v651_v4 = vrot.slane %v650_v2, 1 }
 0x11f   : > { %645 = vst [vmem:[%s1072_s4] sm:$0x1] %v644_v3  ;;  %v652_v5 = vadd.f32 %v651_v4, %v650_v2 }
 0x121   : > { %653 = vst [vmem:[%s1072_s4 + $0x1] sm:$0x1] %v652_v5 }
 0x122 PF: > { %s15_s17 = sadd.s32 1, %s939_s17   ;;  %s1073_s15 = smov %s935_s16 }
 0x123   : > { %p12_p9 = scmp.ge.s32.totalorder %s15_s17, 6   ;;  %s1074_s16 = smov %s1076_s18 }
 0x125   :  { %14 = sbr.rel (!%p12_p9) target bundleno = 2 (0x2), region = 89 }

</bundles_post_ra>
